<compile_context>
chip_gen: v6e
topology: v6e:2x2x1
jax: 0.10.0
libtpu: 0.0.40
codegen_flags: <defaults>
</compile_context>

<pallas_src>
import jax
import jax.numpy as jnp
from jax.experimental import pallas as pl
from jax.experimental.pallas import tpu as pltpu

LANE = 128
OUT_PAD = 128  # lane-dense padding of the classifier head / output store

_SUBLANE = {2: 16, 4: 8}  # bf16 packs 16 rows per vreg tile, f32 packs 8


def _round_up(v, m):
    return -(-v // m) * m


# ------------------------------------------------------------------ kernel

def _gcn_forward_kernel(adj_ref, x_ref, w1_ref, b1_ref, w2_ref, b2_ref,
                        w3_ref, b3_ref, w4_ref, b4_ref, out_ref):
    """Bt graphs per grid step.

    adj_ref: (Bt, n, n) bf16, x_ref: (Bt, n, Fin) bf16, out_ref: (1, Bt, OUT_PAD) f32.
    Weights are [in, out] and zero-padded to 128-lane widths; biases match.
    """
    bt, n, _ = adj_ref.shape
    fin = x_ref.shape[-1]
    h1p = w1_ref.shape[1]
    h2p = w2_ref.shape[1]

    adj = adj_ref[...]                                            # (Bt, n, n)   bf16
    x = x_ref[...]                                                # (Bt, n, Fin) bf16

    # GraphConv 1: relu((A_hat @ X) @ W1 + b1).
    # Aggregate first (Fin << h1 keeps the n^2 term cheap), then flatten the batch into
    # the M/sublane dimension so the weight matmul runs once over Bt*n rows.
    agg = jnp.einsum("bij,bjf->bif", adj, x, preferred_element_type=jnp.float32)
    h = jnp.dot(agg.reshape(bt * n, fin).astype(jnp.bfloat16), w1_ref[...],
                preferred_element_type=jnp.float32) + b1_ref[...]
    h = jnp.maximum(h, 0.0)                                       # (Bt*n, h1p) f32

    # GraphConv 2: relu((A_hat @ H1) @ W2 + b2)
    agg = jnp.einsum("bij,bjf->bif", adj,
                     h.astype(jnp.bfloat16).reshape(bt, n, h1p),
                     preferred_element_type=jnp.float32)
    h = jnp.dot(agg.reshape(bt * n, h1p).astype(jnp.bfloat16), w2_ref[...],
                preferred_element_type=jnp.float32) + b2_ref[...]
    h = jnp.maximum(h, 0.0)                                       # (Bt*n, h2p) f32

    # dgl.mean_nodes: exact per-graph mean readout over the node axis.
    g = jnp.mean(h.reshape(bt, n, h2p), axis=1)                   # (Bt, h2p) f32

    # MLP head batched over all Bt graphs of the step (M = Bt per matmul, not M = 1).
    # TODO(synk): both F.dropout calls use eval-mode identity semantics.
    g = jnp.dot(g.astype(jnp.bfloat16), w3_ref[...],
                preferred_element_type=jnp.float32) + b3_ref[...]
    g = jnp.maximum(g, 0.0)
    g = jnp.dot(g.astype(jnp.bfloat16), w4_ref[...],
                preferred_element_type=jnp.float32) + b4_ref[...]
    out_ref[...] = jax.nn.sigmoid(g)[None]                        # (1, Bt, OUT_PAD)


# ------------------------------------------------------------------ sizing helpers

def _padded_tile_bytes(shape, itemsize):
    """VMEM footprint of one block, honoring (8,128)/(16,128) tile padding."""
    sub = _SUBLANE[itemsize]
    if len(shape) == 1:
        lead, rows, cols = 1, 1, shape[0]
    else:
        rows, cols = shape[-2], shape[-1]
        lead = 1
        for d in shape[:-2]:
            lead *= d
    return lead * _round_up(max(rows, 1), sub) * _round_up(max(cols, 1), LANE) * itemsize


def _vmem_bytes_estimate(bt, n, fin, h1p, h2p, h3p):
    bf16, f32 = 2, 4
    # pipelined (double-buffered) grid blocks
    blocks = 2 * (_padded_tile_bytes((bt, n, n), bf16)
                  + _padded_tile_bytes((bt, n, fin), bf16)
                  + _padded_tile_bytes((1, bt, OUT_PAD), f32))
    # grid-invariant weights/biases (budgeted double-buffered in case single-buffering
    # via pl.Buffered(1) is not honored on this jax build -- they are small either way)
    weights = 2 * (_padded_tile_bytes((fin, h1p), bf16)
                   + _padded_tile_bytes((h1p, h2p), bf16)
                   + _padded_tile_bytes((h2p, h3p), bf16)
                   + _padded_tile_bytes((h3p, OUT_PAD), bf16)
                   + _padded_tile_bytes((1, h1p), f32) + _padded_tile_bytes((1, h2p), f32)
                   + _padded_tile_bytes((1, h3p), f32) + _padded_tile_bytes((1, OUT_PAD), f32))
    # in-kernel f32 activation headroom: a few live (Bt*n, width) tensors
    maxw = max(_round_up(fin, LANE), h1p, h2p)
    acts = 5 * _padded_tile_bytes((bt * n, maxw), f32)
    return blocks + weights + acts


def _vmem_limit_bytes():
    """Generation-dependent VMEM budget (v5e/v6e: 128 MiB physical, v7x: 64 MiB)."""
    cap = None
    try:
        cap = getattr(pltpu.get_tpu_info(), "vmem_capacity_bytes", None)
    except Exception:
        cap = None
    if not cap:
        cap = 64 * 1024 * 1024                     # conservative (v7x) fallback
    return int(min(0.75 * cap, 112 * 1024 * 1024))


def _choose_bt(B, n, fin, h1p, h2p, h3p, vmem_limit):
    # Enough rows per step to fill the MXU: 256 covers v6e/v7x's 2x256^2 array and is a
    # multiple of v5e's 128-wide MXU; cap by batch size and the per-chip VMEM budget.
    bt = min(B, max(1, pl.cdiv(256, n)))
    while bt > 1 and _vmem_bytes_estimate(bt, n, fin, h1p, h2p, h3p) > vmem_limit:
        bt -= 1
    return bt


# ------------------------------------------------------------------ wrappers

def edge_feature_transform(edge_h, mu, sigma):
    """efeat = log((e_h - mu)^2 / -sigma).

    Tiny elementwise op: plain jnp (XLA fuses it) instead of a dedicated pallas_call
    launch + pad/scatter round-trip.  NaN for sigma > 0, faithful to the PyTorch source.
    """
    d = edge_h - mu.reshape(())
    return jnp.log(d * d / -sigma.reshape(()))


def gcn_forward(adj_blocks, x, params, num_classes):
    """Fused GCN forward over a batch of equal-size graphs.

    adj_blocks: [B, n, n] symmetrically-normalized (A+I) per-graph blocks.
    x:          [B, n, in_feats] node features.
    returns     [B, num_classes] sigmoid probabilities.
    """
    B, n, _ = adj_blocks.shape
    fin = x.shape[-1]
    h1, h2, h3 = params["w1"].shape[1], params["w2"].shape[1], params["w3"].shape[1]
    # zero-pad hidden widths to full 128-lane tiles (free MXU columns, unmasked stores)
    h1p, h2p, h3p = (_round_up(d, LANE) for d in (h1, h2, h3))

    vmem_limit = _vmem_limit_bytes()
    bt = _choose_bt(B, n, fin, h1p, h2p, h3p, vmem_limit)
    est = _vmem_bytes_estimate(bt, n, fin, h1p, h2p, h3p)
    assert est <= vmem_limit, (
        f"per-step working set (~{est} B) exceeds the VMEM budget ({vmem_limit} B); "
        "reduce Bt or tile the node dim")

    steps = pl.cdiv(B, bt)
    b_pad = steps * bt

    def _pad_batch(a, dtype):
        a = a.astype(dtype)
        if b_pad != B:
            a = jnp.concatenate(
                [a, jnp.zeros((b_pad - B,) + a.shape[1:], dtype)], axis=0)
        return a

    def _pad2(w, rows, cols, dtype):
        out = jnp.zeros((rows, cols), dtype)
        return out.at[:w.shape[0], :w.shape[1]].set(w.astype(dtype))

    # bf16 MXU operands (f32 accumulation in-kernel); batch padded so every step is full.
    adj_b = _pad_batch(adj_blocks, jnp.bfloat16)
    x_b = _pad_batch(x, jnp.bfloat16)
    w1 = _pad2(params["w1"], fin, h1p, jnp.bfloat16)
    w2 = _pad2(params["w2"], h1p, h2p, jnp.bfloat16)
    w3 = _pad2(params["w3"], h2p, h3p, jnp.bfloat16)
    w4 = _pad2(params["w4"], h3p, OUT_PAD, jnp.bfloat16)
    b1 = _pad2(params["b1"], 1, h1p, jnp.float32)
    b2 = _pad2(params["b2"], 1, h2p, jnp.float32)
    b3 = _pad2(params["b3"], 1, h3p, jnp.float32)
    b4 = _pad2(params["b4"], 1, OUT_PAD, jnp.float32)

    args = (adj_b, x_b, w1, b1, w2, b2, w3, b3, w4, b4)

    flops = 2 * b_pad * (n * n * fin + n * fin * h1p + n * n * h1p
                         + n * h1p * h2p + h2p * h3p + h3p * OUT_PAD)
    bytes_accessed = sum(int(a.size) * a.dtype.itemsize for a in args) + b_pad * OUT_PAD * 4
    cost = pl.CostEstimate(flops=flops, transcendentals=b_pad * OUT_PAD,
                           bytes_accessed=bytes_accessed)

    def _call(single_buffer_weights):
        def _resident(shape):
            # weights/biases are grid-invariant: single-buffer to halve their footprint
            if single_buffer_weights:
                return pl.BlockSpec(shape, lambda s: (0, 0),
                                    pipeline_mode=pl.Buffered(1))
            return pl.BlockSpec(shape, lambda s: (0, 0))

        in_specs = [
            pl.BlockSpec((bt, n, n), lambda s: (s, 0, 0)),      # Bt adjacency blocks
            pl.BlockSpec((bt, n, fin), lambda s: (s, 0, 0)),    # Bt node-feature blocks
            _resident(w1.shape), _resident(b1.shape),
            _resident(w2.shape), _resident(b2.shape),
            _resident(w3.shape), _resident(b3.shape),
            _resident(w4.shape), _resident(b4.shape),
        ]
        out_specs = pl.BlockSpec((1, bt, OUT_PAD), lambda s: (s, 0, 0))
        return pl.pallas_call(
            _gcn_forward_kernel,
            out_shape=jax.ShapeDtypeStruct((steps, bt, OUT_PAD), jnp.float32),
            grid=(steps,),
            in_specs=in_specs,
            out_specs=out_specs,
            compiler_params=pltpu.CompilerParams(
                dimension_semantics=("parallel",),   # shard graph-batch steps across TCs
                vmem_limit_bytes=vmem_limit),
            cost_estimate=cost,
        )(*args)

    try:
        out = _call(True)
    except Exception:   # pipeline_mode unsupported on this jax build -> default buffering
        out = _call(False)

    return out.reshape(b_pad, OUT_PAD)[:B, :num_classes]


# ------------------------------------------------------------------ params / data / reference

def init_params(key, in_feats, h1, h2, h3, num_classes):
    ks = jax.random.split(key, 8)
    s = 0.1
    return {
        "w1": s * jax.random.normal(ks[0], (in_feats, h1), jnp.float32),
        "b1": s * jax.random.normal(ks[1], (1, h1), jnp.float32),
        "w2": s * jax.random.normal(ks[2], (h1, h2), jnp.float32),
        "b2": s * jax.random.normal(ks[3], (1, h2), jnp.float32),
        "w3": s * jax.random.normal(ks[4], (h2, h3), jnp.float32),
        "b3": s * jax.random.normal(ks[5], (1, h3), jnp.float32),
        "w4": s * jax.random.normal(ks[6], (h3, num_classes), jnp.float32),
        "b4": s * jax.random.normal(ks[7], (1, num_classes), jnp.float32),
        # param_mu / param_sigma from the PyTorch __init__
        "mu": jnp.zeros((1, 1), jnp.float32),
        "sigma": jnp.ones((1, 1), jnp.float32),
    }


def build_batched_graph(key, batch, nodes_per_graph):
    """Random undirected graphs (+ self loops); per-graph symmetric normalization.

    Returns the batched block-diagonal adjacency as [B, n, n] (never densified).
    """
    adj = (jax.random.uniform(key, (batch, nodes_per_graph, nodes_per_graph)) < 0.3)
    adj = adj.astype(jnp.float32)
    adj = jnp.maximum(adj, jnp.transpose(adj, (0, 2, 1)))
    adj = jnp.maximum(adj, jnp.eye(nodes_per_graph, dtype=jnp.float32)[None])
    deg_inv_sqrt = 1.0 / jnp.sqrt(adj.sum(axis=-1))
    return adj * deg_inv_sqrt[:, :, None] * deg_inv_sqrt[:, None, :]


def gcn_reference(adj_blocks, x, params):
    """Pure-JAX f32 reference of the PyTorch forward (eval-mode dropout)."""
    h = jnp.einsum("bij,bjf->bif", adj_blocks, x)
    h = jax.nn.relu(h @ params["w1"] + params["b1"])
    h = jnp.einsum("bij,bjf->bif", adj_blocks, h)
    h = jax.nn.relu(h @ params["w2"] + params["b2"])
    g = h.mean(axis=1)                                   # mean_nodes
    g = jax.nn.relu(g @ params["w3"] + params["b3"])
    return jax.nn.sigmoid(g @ params["w4"] + params["b4"])


# ------------------------------------------------------------------ main

if __name__ == "__main__":
    # Small shapes consistent with GCN(in_feats, h1, h2, h3, num_classes)
    batch, nodes_per_graph = 8, 16
    in_feats, h1, h2, h3, num_classes = 8, 32, 32, 16, 4
    num_edges = 64

    key = jax.random.PRNGKey(0)
    k_graph, k_x, k_e, k_params = jax.random.split(key, 4)

    adj_norm = build_batched_graph(k_graph, batch, nodes_per_graph)            # [B, n, n]
    node_feats = jax.random.normal(k_x, (batch, nodes_per_graph, in_feats), jnp.float32)
    edge_feats = jax.random.normal(k_e, (num_edges, 1), jnp.float32)

    params = init_params(k_params, in_feats, h1, h2, h3, num_classes)

    # forward: g.edata['h'] = log((e_h - mu)^2 / -sigma)  (side effect on the graph;
    # NaN with the default sigma=1 exactly as in the PyTorch source)
    new_edge_feats = edge_feature_transform(edge_feats, params["mu"], params["sigma"])
    # forward: conv1 -> relu -> conv2 -> relu -> mean_nodes -> dnn1 -> relu -> dnn2 -> sigmoid
    out = gcn_forward(adj_norm, node_feats, params, num_classes)

    jax.block_until_ready((new_edge_feats, out))

    assert out.shape == (batch, num_classes)
    assert new_edge_feats.shape == edge_feats.shape
    assert bool(jnp.all(jnp.isfinite(out)))

    ref = gcn_reference(adj_norm, node_feats, params)
    err = float(jnp.max(jnp.abs(out - ref)))
    assert err < 5e-2, f"kernel/reference mismatch: max abs err = {err}"

    print("KERNEL_OK")
</pallas_src>

<mosaic_0001>
module attributes {stable_mosaic.version = 11 : i64} {
  func.func @_gcn_forward_kernel(%arg0: i32, %arg1: memref<8x16x16xbf16, #tpu.memory_space<vmem>>, %arg2: memref<8x16x8xbf16, #tpu.memory_space<vmem>>, %arg3: memref<8x128xbf16, #tpu.memory_space<vmem>>, %arg4: memref<1x128xf32, #tpu.memory_space<vmem>>, %arg5: memref<128x128xbf16, #tpu.memory_space<vmem>>, %arg6: memref<1x128xf32, #tpu.memory_space<vmem>>, %arg7: memref<128x128xbf16, #tpu.memory_space<vmem>>, %arg8: memref<1x128xf32, #tpu.memory_space<vmem>>, %arg9: memref<128x128xbf16, #tpu.memory_space<vmem>>, %arg10: memref<1x128xf32, #tpu.memory_space<vmem>>, %arg11: memref<1x8x128xf32, #tpu.memory_space<vmem>>) attributes {dimension_semantics = [#tpu.dimension_semantics<parallel>], iteration_bounds = array<i64: 1>, scalar_prefetch = 0 : i64, scratch_operands = 0 : i64, tpu.core_type = #tpu.core_type<tc>, window_params = [{transform_indices = @transform_0, window_bounds = array<i64: 8, 16, 16>}, {transform_indices = @transform_1, window_bounds = array<i64: 8, 16, 8>}, {pipeline_mode = #tpu.pipeline_mode<synchronous>, transform_indices = @transform_2, window_bounds = array<i64: 8, 128>}, {pipeline_mode = #tpu.pipeline_mode<synchronous>, transform_indices = @transform_3, window_bounds = array<i64: 1, 128>}, {pipeline_mode = #tpu.pipeline_mode<synchronous>, transform_indices = @transform_4, window_bounds = array<i64: 128, 128>}, {pipeline_mode = #tpu.pipeline_mode<synchronous>, transform_indices = @transform_5, window_bounds = array<i64: 1, 128>}, {pipeline_mode = #tpu.pipeline_mode<synchronous>, transform_indices = @transform_6, window_bounds = array<i64: 128, 128>}, {pipeline_mode = #tpu.pipeline_mode<synchronous>, transform_indices = @transform_7, window_bounds = array<i64: 1, 128>}, {pipeline_mode = #tpu.pipeline_mode<synchronous>, transform_indices = @transform_8, window_bounds = array<i64: 128, 128>}, {pipeline_mode = #tpu.pipeline_mode<synchronous>, transform_indices = @transform_9, window_bounds = array<i64: 1, 128>}, {transform_indices = @transform_10, window_bounds = array<i64: 1, 8, 128>}]} {
    %c0 = arith.constant 0 : index
    %c0_0 = arith.constant 0 : index
    %c0_1 = arith.constant 0 : index
    %0 = vector.load %arg1[%c0, %c0_0, %c0_1] : memref<8x16x16xbf16, #tpu.memory_space<vmem>>, vector<8x16x16xbf16>
    %c0_2 = arith.constant 0 : index
    %c0_3 = arith.constant 0 : index
    %c0_4 = arith.constant 0 : index
    %1 = vector.load %arg2[%c0_2, %c0_3, %c0_4] : memref<8x16x8xbf16, #tpu.memory_space<vmem>>, vector<8x16x8xbf16>
    "tpu.trace_start"() <{level = 10 : i32, message = "bij,bjf->bif"}> : () -> ()
    %cst = arith.constant dense<0.000000e+00> : vector<8x16x8xf32>
    %2 = tpu.matmul %0, %1, %cst {dimension_numbers = #tpu.dot_dimension_numbers<[2], [1], [1], [2], [0, 0, 0, 1, 1, 2], [0], [0]>} : vector<8x16x16xbf16>, vector<8x16x8xbf16>, vector<8x16x8xf32> -> vector<8x16x8xf32>
    "tpu.trace_stop"() : () -> ()
    %3 = vector.shape_cast %2 : vector<8x16x8xf32> to vector<128x8xf32>
    %4 = arith.truncf %3 : vector<128x8xf32> to vector<128x8xbf16>
    %c0_5 = arith.constant 0 : index
    %c0_6 = arith.constant 0 : index
    %5 = vector.load %arg3[%c0_5, %c0_6] : memref<8x128xbf16, #tpu.memory_space<vmem>>, vector<8x128xbf16>
    %cst_7 = arith.constant dense<0.000000e+00> : vector<128x128xf32>
    %6 = tpu.matmul %4, %5, %cst_7 {dimension_numbers = #tpu.dot_dimension_numbers<[1], [0], [0], [1], [0, 0, 1, 1], [], []>} : vector<128x8xbf16>, vector<8x128xbf16>, vector<128x128xf32> -> vector<128x128xf32>
    %c0_8 = arith.constant 0 : index
    %c0_9 = arith.constant 0 : index
    %7 = vector.load %arg4[%c0_8, %c0_9] : memref<1x128xf32, #tpu.memory_space<vmem>>, vector<1x128xf32>
    %8 = vector.broadcast %7 : vector<1x128xf32> to vector<128x128xf32>
    %9 = arith.addf %6, %8 : vector<128x128xf32>
    %cst_10 = arith.constant 0.000000e+00 : f32
    %10 = vector.broadcast %cst_10 : f32 to vector<128x128xf32>
    %11 = arith.maximumf %9, %10 : vector<128x128xf32>
    %12 = arith.truncf %11 : vector<128x128xf32> to vector<128x128xbf16>
    %13 = vector.shape_cast %12 : vector<128x128xbf16> to vector<8x16x128xbf16>
    "tpu.trace_start"() <{level = 10 : i32, message = "bij,bjf->bif"}> : () -> ()
    %cst_11 = arith.constant dense<0.000000e+00> : vector<8x16x128xf32>
    %14 = tpu.matmul %0, %13, %cst_11 {dimension_numbers = #tpu.dot_dimension_numbers<[2], [1], [1], [2], [0, 0, 0, 1, 1, 2], [0], [0]>} : vector<8x16x16xbf16>, vector<8x16x128xbf16>, vector<8x16x128xf32> -> vector<8x16x128xf32>
    "tpu.trace_stop"() : () -> ()
    %15 = vector.shape_cast %14 : vector<8x16x128xf32> to vector<128x128xf32>
    %16 = arith.truncf %15 : vector<128x128xf32> to vector<128x128xbf16>
    %c0_12 = arith.constant 0 : index
    %c0_13 = arith.constant 0 : index
    %17 = vector.load %arg5[%c0_12, %c0_13] : memref<128x128xbf16, #tpu.memory_space<vmem>>, vector<128x128xbf16>
    %cst_14 = arith.constant dense<0.000000e+00> : vector<128x128xf32>
    %18 = tpu.matmul %16, %17, %cst_14 {dimension_numbers = #tpu.dot_dimension_numbers<[1], [0], [0], [1], [0, 0, 1, 1], [], []>} : vector<128x128xbf16>, vector<128x128xbf16>, vector<128x128xf32> -> vector<128x128xf32>
    %c0_15 = arith.constant 0 : index
    %c0_16 = arith.constant 0 : index
    %19 = vector.load %arg6[%c0_15, %c0_16] : memref<1x128xf32, #tpu.memory_space<vmem>>, vector<1x128xf32>
    %20 = vector.broadcast %19 : vector<1x128xf32> to vector<128x128xf32>
    %21 = arith.addf %18, %20 : vector<128x128xf32>
    %cst_17 = arith.constant 0.000000e+00 : f32
    %22 = vector.broadcast %cst_17 : f32 to vector<128x128xf32>
    %23 = arith.maximumf %21, %22 : vector<128x128xf32>
    %24 = vector.shape_cast %23 : vector<128x128xf32> to vector<8x16x128xf32>
    %cst_18 = arith.constant dense<0.000000e+00> : vector<8x128xf32>
    %25 = vector.multi_reduction <add>, %24, %cst_18 [1] : vector<8x16x128xf32> to vector<8x128xf32>
    %cst_19 = arith.constant 1.600000e+01 : f32
    %26 = vector.broadcast %cst_19 : f32 to vector<8x128xf32>
    %27 = arith.divf %25, %26 : vector<8x128xf32>
    %28 = arith.truncf %27 : vector<8x128xf32> to vector<8x128xbf16>
    %c0_20 = arith.constant 0 : index
    %c0_21 = arith.constant 0 : index
    %29 = vector.load %arg7[%c0_20, %c0_21] : memref<128x128xbf16, #tpu.memory_space<vmem>>, vector<128x128xbf16>
    %cst_22 = arith.constant dense<0.000000e+00> : vector<8x128xf32>
    %30 = tpu.matmul %28, %29, %cst_22 {dimension_numbers = #tpu.dot_dimension_numbers<[1], [0], [0], [1], [0, 0, 1, 1], [], []>} : vector<8x128xbf16>, vector<128x128xbf16>, vector<8x128xf32> -> vector<8x128xf32>
    %c0_23 = arith.constant 0 : index
    %c0_24 = arith.constant 0 : index
    %31 = vector.load %arg8[%c0_23, %c0_24] : memref<1x128xf32, #tpu.memory_space<vmem>>, vector<1x128xf32>
    %32 = vector.broadcast %31 : vector<1x128xf32> to vector<8x128xf32>
    %33 = arith.addf %30, %32 : vector<8x128xf32>
    %cst_25 = arith.constant 0.000000e+00 : f32
    %34 = vector.broadcast %cst_25 : f32 to vector<8x128xf32>
    %35 = arith.maximumf %33, %34 : vector<8x128xf32>
    %36 = arith.truncf %35 : vector<8x128xf32> to vector<8x128xbf16>
    %c0_26 = arith.constant 0 : index
    %c0_27 = arith.constant 0 : index
    %37 = vector.load %arg9[%c0_26, %c0_27] : memref<128x128xbf16, #tpu.memory_space<vmem>>, vector<128x128xbf16>
    %cst_28 = arith.constant dense<0.000000e+00> : vector<8x128xf32>
    %38 = tpu.matmul %36, %37, %cst_28 {dimension_numbers = #tpu.dot_dimension_numbers<[1], [0], [0], [1], [0, 0, 1, 1], [], []>} : vector<8x128xbf16>, vector<128x128xbf16>, vector<8x128xf32> -> vector<8x128xf32>
    %c0_29 = arith.constant 0 : index
    %c0_30 = arith.constant 0 : index
    %39 = vector.load %arg10[%c0_29, %c0_30] : memref<1x128xf32, #tpu.memory_space<vmem>>, vector<1x128xf32>
    %40 = vector.broadcast %39 : vector<1x128xf32> to vector<8x128xf32>
    %41 = arith.addf %38, %40 : vector<8x128xf32>
    %42 = arith.negf %41 : vector<8x128xf32>
    %43 = math.exp %42 : vector<8x128xf32>
    %cst_31 = arith.constant 1.000000e+00 : f32
    %44 = vector.broadcast %cst_31 : f32 to vector<8x128xf32>
    %45 = arith.addf %44, %43 : vector<8x128xf32>
    %46 = arith.divf %44, %45 : vector<8x128xf32>
    %47 = vector.shape_cast %46 : vector<8x128xf32> to vector<1x8x128xf32>
    %c0_32 = arith.constant 0 : index
    %c0_33 = arith.constant 0 : index
    %c0_34 = arith.constant 0 : index
    %48 = vector.load %arg11[%c0_32, %c0_33, %c0_34] : memref<1x8x128xf32, #tpu.memory_space<vmem>>, vector<1x8x128xf32>
    tpu.vector_store %arg11[%c0_32, %c0_33, %c0_34], %47 {strides = array<i32>} : memref<1x8x128xf32, #tpu.memory_space<vmem>>, vector<1x8x128xf32>,
    return
  }
  func.func @transform_0(%arg0: i32) -> (i32, i32, i32) {
    %c0_i32 = arith.constant 0 : i32
    %c0_i32_0 = arith.constant 0 : i32
    %c0_i32_1 = arith.constant 0 : i32
    return %arg0, %c0_i32, %c0_i32_0 : i32, i32, i32
  }
  func.func @transform_1(%arg0: i32) -> (i32, i32, i32) {
    %c0_i32 = arith.constant 0 : i32
    %c0_i32_0 = arith.constant 0 : i32
    %c0_i32_1 = arith.constant 0 : i32
    return %arg0, %c0_i32, %c0_i32_0 : i32, i32, i32
  }
  func.func @transform_2(%arg0: i32) -> (i32, i32) {
    %c0_i32 = arith.constant 0 : i32
    %c0_i32_0 = arith.constant 0 : i32
    %c0_i32_1 = arith.constant 0 : i32
    return %c0_i32, %c0_i32_0 : i32, i32
  }
  func.func @transform_3(%arg0: i32) -> (i32, i32) {
    %c0_i32 = arith.constant 0 : i32
    %c0_i32_0 = arith.constant 0 : i32
    %c0_i32_1 = arith.constant 0 : i32
    return %c0_i32, %c0_i32_0 : i32, i32
  }
  func.func @transform_4(%arg0: i32) -> (i32, i32) {
    %c0_i32 = arith.constant 0 : i32
    %c0_i32_0 = arith.constant 0 : i32
    %c0_i32_1 = arith.constant 0 : i32
    return %c0_i32, %c0_i32_0 : i32, i32
  }
  func.func @transform_5(%arg0: i32) -> (i32, i32) {
    %c0_i32 = arith.constant 0 : i32
    %c0_i32_0 = arith.constant 0 : i32
    %c0_i32_1 = arith.constant 0 : i32
    return %c0_i32, %c0_i32_0 : i32, i32
  }
  func.func @transform_6(%arg0: i32) -> (i32, i32) {
    %c0_i32 = arith.constant 0 : i32
    %c0_i32_0 = arith.constant 0 : i32
    %c0_i32_1 = arith.constant 0 : i32
    return %c0_i32, %c0_i32_0 : i32, i32
  }
  func.func @transform_7(%arg0: i32) -> (i32, i32) {
    %c0_i32 = arith.constant 0 : i32
    %c0_i32_0 = arith.constant 0 : i32
    %c0_i32_1 = arith.constant 0 : i32
    return %c0_i32, %c0_i32_0 : i32, i32
  }
  func.func @transform_8(%arg0: i32) -> (i32, i32) {
    %c0_i32 = arith.constant 0 : i32
    %c0_i32_0 = arith.constant 0 : i32
    %c0_i32_1 = arith.constant 0 : i32
    return %c0_i32, %c0_i32_0 : i32, i32
  }
  func.func @transform_9(%arg0: i32) -> (i32, i32) {
    %c0_i32 = arith.constant 0 : i32
    %c0_i32_0 = arith.constant 0 : i32
    %c0_i32_1 = arith.constant 0 : i32
    return %c0_i32, %c0_i32_0 : i32, i32
  }
  func.func @transform_10(%arg0: i32) -> (i32, i32, i32) {
    %c0_i32 = arith.constant 0 : i32
    %c0_i32_0 = arith.constant 0 : i32
    %c0_i32_1 = arith.constant 0 : i32
    return %arg0, %c0_i32, %c0_i32_0 : i32, i32, i32
  }
}

module attributes {stable_mosaic.version = 11 : i64} {
  func.func @_gcn_forward_kernel(%arg0: i32, %arg1: memref<8x16x16xbf16, #tpu.memory_space<vmem>>, %arg2: memref<8x16x8xbf16, #tpu.memory_space<vmem>>, %arg3: memref<8x128xbf16, #tpu.memory_space<vmem>>, %arg4: memref<1x128xf32, #tpu.memory_space<vmem>>, %arg5: memref<128x128xbf16, #tpu.memory_space<vmem>>, %arg6: memref<1x128xf32, #tpu.memory_space<vmem>>, %arg7: memref<128x128xbf16, #tpu.memory_space<vmem>>, %arg8: memref<1x128xf32, #tpu.memory_space<vmem>>, %arg9: memref<128x128xbf16, #tpu.memory_space<vmem>>, %arg10: memref<1x128xf32, #tpu.memory_space<vmem>>, %arg11: memref<1x8x128xf32, #tpu.memory_space<vmem>>) attributes {dimension_semantics = [#tpu.dimension_semantics<parallel>], iteration_bounds = array<i64: 1>, scalar_prefetch = 0 : i64, scratch_operands = 0 : i64, tpu.core_type = #tpu.core_type<tc>, window_params = [{transform_indices = @transform_0, window_bounds = array<i64: 8, 16, 16>}, {transform_indices = @transform_1, window_bounds = array<i64: 8, 16, 8>}, {pipeline_mode = #tpu.pipeline_mode<synchronous>, transform_indices = @transform_2, window_bounds = array<i64: 8, 128>}, {pipeline_mode = #tpu.pipeline_mode<synchronous>, transform_indices = @transform_3, window_bounds = array<i64: 1, 128>}, {pipeline_mode = #tpu.pipeline_mode<synchronous>, transform_indices = @transform_4, window_bounds = array<i64: 128, 128>}, {pipeline_mode = #tpu.pipeline_mode<synchronous>, transform_indices = @transform_5, window_bounds = array<i64: 1, 128>}, {pipeline_mode = #tpu.pipeline_mode<synchronous>, transform_indices = @transform_6, window_bounds = array<i64: 128, 128>}, {pipeline_mode = #tpu.pipeline_mode<synchronous>, transform_indices = @transform_7, window_bounds = array<i64: 1, 128>}, {pipeline_mode = #tpu.pipeline_mode<synchronous>, transform_indices = @transform_8, window_bounds = array<i64: 128, 128>}, {pipeline_mode = #tpu.pipeline_mode<synchronous>, transform_indices = @transform_9, window_bounds = array<i64: 1, 128>}, {transform_indices = @transform_10, window_bounds = array<i64: 1, 8, 128>}]} {
    %c0 = arith.constant 0 : index
    %c0_0 = arith.constant 0 : index
    %c0_1 = arith.constant 0 : index
    %0 = vector.load %arg1[%c0, %c0_0, %c0_1] : memref<8x16x16xbf16, #tpu.memory_space<vmem>>, vector<8x16x16xbf16>
    %c0_2 = arith.constant 0 : index
    %c0_3 = arith.constant 0 : index
    %c0_4 = arith.constant 0 : index
    %1 = vector.load %arg2[%c0_2, %c0_3, %c0_4] : memref<8x16x8xbf16, #tpu.memory_space<vmem>>, vector<8x16x8xbf16>
    "tpu.trace_start"() <{level = 10 : i32, message = "bij,bjf->bif"}> : () -> ()
    %cst = arith.constant dense<0.000000e+00> : vector<8x16x8xf32>
    %2 = tpu.matmul %0, %1, %cst {dimension_numbers = #tpu.dot_dimension_numbers<[2], [1], [1], [2], [0, 0, 0, 1, 1, 2], [0], [0]>} : vector<8x16x16xbf16>, vector<8x16x8xbf16>, vector<8x16x8xf32> -> vector<8x16x8xf32>
    "tpu.trace_stop"() : () -> ()
    %3 = vector.shape_cast %2 : vector<8x16x8xf32> to vector<128x8xf32>
    %4 = arith.truncf %3 : vector<128x8xf32> to vector<128x8xbf16>
    %c0_5 = arith.constant 0 : index
    %c0_6 = arith.constant 0 : index
    %5 = vector.load %arg3[%c0_5, %c0_6] : memref<8x128xbf16, #tpu.memory_space<vmem>>, vector<8x128xbf16>
    %cst_7 = arith.constant dense<0.000000e+00> : vector<128x128xf32>
    %6 = tpu.matmul %4, %5, %cst_7 {dimension_numbers = #tpu.dot_dimension_numbers<[1], [0], [0], [1], [0, 0, 1, 1], [], []>} : vector<128x8xbf16>, vector<8x128xbf16>, vector<128x128xf32> -> vector<128x128xf32>
    %c0_8 = arith.constant 0 : index
    %c0_9 = arith.constant 0 : index
    %7 = vector.load %arg4[%c0_8, %c0_9] : memref<1x128xf32, #tpu.memory_space<vmem>>, vector<1x128xf32>
    %8 = vector.broadcast %7 : vector<1x128xf32> to vector<128x128xf32>
    %9 = arith.addf %6, %8 : vector<128x128xf32>
    %cst_10 = arith.constant 0.000000e+00 : f32
    %10 = vector.broadcast %cst_10 : f32 to vector<128x128xf32>
    %11 = arith.maximumf %9, %10 : vector<128x128xf32>
    %12 = arith.truncf %11 : vector<128x128xf32> to vector<128x128xbf16>
    %13 = vector.shape_cast %12 : vector<128x128xbf16> to vector<8x16x128xbf16>
    "tpu.trace_start"() <{level = 10 : i32, message = "bij,bjf->bif"}> : () -> ()
    %cst_11 = arith.constant dense<0.000000e+00> : vector<8x16x128xf32>
    %14 = tpu.matmul %0, %13, %cst_11 {dimension_numbers = #tpu.dot_dimension_numbers<[2], [1], [1], [2], [0, 0, 0, 1, 1, 2], [0], [0]>} : vector<8x16x16xbf16>, vector<8x16x128xbf16>, vector<8x16x128xf32> -> vector<8x16x128xf32>
    "tpu.trace_stop"() : () -> ()
    %15 = vector.shape_cast %14 : vector<8x16x128xf32> to vector<128x128xf32>
    %16 = arith.truncf %15 : vector<128x128xf32> to vector<128x128xbf16>
    %c0_12 = arith.constant 0 : index
    %c0_13 = arith.constant 0 : index
    %17 = vector.load %arg5[%c0_12, %c0_13] : memref<128x128xbf16, #tpu.memory_space<vmem>>, vector<128x128xbf16>
    %cst_14 = arith.constant dense<0.000000e+00> : vector<128x128xf32>
    %18 = tpu.matmul %16, %17, %cst_14 {dimension_numbers = #tpu.dot_dimension_numbers<[1], [0], [0], [1], [0, 0, 1, 1], [], []>} : vector<128x128xbf16>, vector<128x128xbf16>, vector<128x128xf32> -> vector<128x128xf32>
    %c0_15 = arith.constant 0 : index
    %c0_16 = arith.constant 0 : index
    %19 = vector.load %arg6[%c0_15, %c0_16] : memref<1x128xf32, #tpu.memory_space<vmem>>, vector<1x128xf32>
    %20 = vector.broadcast %19 : vector<1x128xf32> to vector<128x128xf32>
    %21 = arith.addf %18, %20 : vector<128x128xf32>
    %cst_17 = arith.constant 0.000000e+00 : f32
    %22 = vector.broadcast %cst_17 : f32 to vector<128x128xf32>
    %23 = arith.maximumf %21, %22 : vector<128x128xf32>
    %24 = vector.shape_cast %23 : vector<128x128xf32> to vector<8x16x128xf32>
    %cst_18 = arith.constant dense<0.000000e+00> : vector<8x128xf32>
    %25 = vector.multi_reduction <add>, %24, %cst_18 [1] : vector<8x16x128xf32> to vector<8x128xf32>
    %cst_19 = arith.constant 1.600000e+01 : f32
    %26 = vector.broadcast %cst_19 : f32 to vector<8x128xf32>
    %27 = arith.divf %25, %26 : vector<8x128xf32>
    %28 = arith.truncf %27 : vector<8x128xf32> to vector<8x128xbf16>
    %c0_20 = arith.constant 0 : index
    %c0_21 = arith.constant 0 : index
    %29 = vector.load %arg7[%c0_20, %c0_21] : memref<128x128xbf16, #tpu.memory_space<vmem>>, vector<128x128xbf16>
    %cst_22 = arith.constant dense<0.000000e+00> : vector<8x128xf32>
    %30 = tpu.matmul %28, %29, %cst_22 {dimension_numbers = #tpu.dot_dimension_numbers<[1], [0], [0], [1], [0, 0, 1, 1], [], []>} : vector<8x128xbf16>, vector<128x128xbf16>, vector<8x128xf32> -> vector<8x128xf32>
    %c0_23 = arith.constant 0 : index
    %c0_24 = arith.constant 0 : index
    %31 = vector.load %arg8[%c0_23, %c0_24] : memref<1x128xf32, #tpu.memory_space<vmem>>, vector<1x128xf32>
    %32 = vector.broadcast %31 : vector<1x128xf32> to vector<8x128xf32>
    %33 = arith.addf %30, %32 : vector<8x128xf32>
    %cst_25 = arith.constant 0.000000e+00 : f32
    %34 = vector.broadcast %cst_25 : f32 to vector<8x128xf32>
    %35 = arith.maximumf %33, %34 : vector<8x128xf32>
    %36 = arith.truncf %35 : vector<8x128xf32> to vector<8x128xbf16>
    %c0_26 = arith.constant 0 : index
    %c0_27 = arith.constant 0 : index
    %37 = vector.load %arg9[%c0_26, %c0_27] : memref<128x128xbf16, #tpu.memory_space<vmem>>, vector<128x128xbf16>
    %cst_28 = arith.constant dense<0.000000e+00> : vector<8x128xf32>
    %38 = tpu.matmul %36, %37, %cst_28 {dimension_numbers = #tpu.dot_dimension_numbers<[1], [0], [0], [1], [0, 0, 1, 1], [], []>} : vector<8x128xbf16>, vector<128x128xbf16>, vector<8x128xf32> -> vector<8x128xf32>
    %c0_29 = arith.constant 0 : index
    %c0_30 = arith.constant 0 : index
    %39 = vector.load %arg10[%c0_29, %c0_30] : memref<1x128xf32, #tpu.memory_space<vmem>>, vector<1x128xf32>
    %40 = vector.broadcast %39 : vector<1x128xf32> to vector<8x128xf32>
    %41 = arith.addf %38, %40 : vector<8x128xf32>
    %42 = arith.negf %41 : vector<8x128xf32>
    %43 = math.exp %42 : vector<8x128xf32>
    %cst_31 = arith.constant 1.000000e+00 : f32
    %44 = vector.broadcast %cst_31 : f32 to vector<8x128xf32>
    %45 = arith.addf %44, %43 : vector<8x128xf32>
    %46 = arith.divf %44, %45 : vector<8x128xf32>
    %47 = vector.shape_cast %46 : vector<8x128xf32> to vector<1x8x128xf32>
    %c0_32 = arith.constant 0 : index
    %c0_33 = arith.constant 0 : index
    %c0_34 = arith.constant 0 : index
    %48 = vector.load %arg11[%c0_32, %c0_33, %c0_34] : memref<1x8x128xf32, #tpu.memory_space<vmem>>, vector<1x8x128xf32>
    tpu.vector_store %arg11[%c0_32, %c0_33, %c0_34], %47 {strides = array<i32>} : memref<1x8x128xf32, #tpu.memory_space<vmem>>, vector<1x8x128xf32>,
    return
  }
  func.func @transform_0(%arg0: i32) -> (i32, i32, i32) {
    %c0_i32 = arith.constant 0 : i32
    %c0_i32_0 = arith.constant 0 : i32
    %c0_i32_1 = arith.constant 0 : i32
    return %arg0, %c0_i32, %c0_i32_0 : i32, i32, i32
  }
  func.func @transform_1(%arg0: i32) -> (i32, i32, i32) {
    %c0_i32 = arith.constant 0 : i32
    %c0_i32_0 = arith.constant 0 : i32
    %c0_i32_1 = arith.constant 0 : i32
    return %arg0, %c0_i32, %c0_i32_0 : i32, i32, i32
  }
  func.func @transform_2(%arg0: i32) -> (i32, i32) {
    %c0_i32 = arith.constant 0 : i32
    %c0_i32_0 = arith.constant 0 : i32
    %c0_i32_1 = arith.constant 0 : i32
    return %c0_i32, %c0_i32_0 : i32, i32
  }
  func.func @transform_3(%arg0: i32) -> (i32, i32) {
    %c0_i32 = arith.constant 0 : i32
    %c0_i32_0 = arith.constant 0 : i32
    %c0_i32_1 = arith.constant 0 : i32
    return %c0_i32, %c0_i32_0 : i32, i32
  }
  func.func @transform_4(%arg0: i32) -> (i32, i32) {
    %c0_i32 = arith.constant 0 : i32
    %c0_i32_0 = arith.constant 0 : i32
    %c0_i32_1 = arith.constant 0 : i32
    return %c0_i32, %c0_i32_0 : i32, i32
  }
  func.func @transform_5(%arg0: i32) -> (i32, i32) {
    %c0_i32 = arith.constant 0 : i32
    %c0_i32_0 = arith.constant 0 : i32
    %c0_i32_1 = arith.constant 0 : i32
    return %c0_i32, %c0_i32_0 : i32, i32
  }
  func.func @transform_6(%arg0: i32) -> (i32, i32) {
    %c0_i32 = arith.constant 0 : i32
    %c0_i32_0 = arith.constant 0 : i32
    %c0_i32_1 = arith.constant 0 : i32
    return %c0_i32, %c0_i32_0 : i32, i32
  }
  func.func @transform_7(%arg0: i32) -> (i32, i32) {
    %c0_i32 = arith.constant 0 : i32
    %c0_i32_0 = arith.constant 0 : i32
    %c0_i32_1 = arith.constant 0 : i32
    return %c0_i32, %c0_i32_0 : i32, i32
  }
  func.func @transform_8(%arg0: i32) -> (i32, i32) {
    %c0_i32 = arith.constant 0 : i32
    %c0_i32_0 = arith.constant 0 : i32
    %c0_i32_1 = arith.constant 0 : i32
    return %c0_i32, %c0_i32_0 : i32, i32
  }
  func.func @transform_9(%arg0: i32) -> (i32, i32) {
    %c0_i32 = arith.constant 0 : i32
    %c0_i32_0 = arith.constant 0 : i32
    %c0_i32_1 = arith.constant 0 : i32
    return %c0_i32, %c0_i32_0 : i32, i32
  }
  func.func @transform_10(%arg0: i32) -> (i32, i32, i32) {
    %c0_i32 = arith.constant 0 : i32
    %c0_i32_0 = arith.constant 0 : i32
    %c0_i32_1 = arith.constant 0 : i32
    return %arg0, %c0_i32, %c0_i32_0 : i32, i32, i32
  }
}

</mosaic_0001>

<bundles_post_ra>
// kernel: tpu_custom_call.1
= control target key start
LH: loop header
LB: loop body
LE: loop exit
PB: predicated region body
PF: predicated region fallthrough
CT: control target
= control target key end

     0   :  { %15 = vsyncpa [#allocation3], 0  ;;  %s2359_s0 = inlined_call_operand.vmem [shape: bf16[8,16,16], index: 0, kind: input, shape index: {}]   ;;  %s2360_s1 = inlined_call_operand.vmem [shape: bf16[8,16,8], index: 1, kind: input, shape index: {}]   ;;  %s2361_s2 = inlined_call_operand.vmem [shape: bf16[8,128], index: 2, kind: input, shape index: {}]   ;;  %s2362_s3 = inlined_call_operand.vmem [shape: f32[1,128], index: 3, kind: input, shape index: {}]   ;;  %s2363_s4 = inlined_call_operand.hbm [shape: bf16[128,128], index: 4, kind: input, shape index: {}]   ;;  %s2364_s5 = inlined_call_operand.vmem [shape: f32[1,128], index: 5, kind: input, shape index: {}]   ;;  %s2365_s6 = inlined_call_operand.hbm [shape: bf16[128,128], index: 6, kind: input, shape index: {}]   ;;  %s2366_s7 = inlined_call_operand.vmem [shape: f32[1,128], index: 7, kind: input, shape index: {}]   ;;  %s2367_s8 = inlined_call_operand.hbm [shape: bf16[128,128], index: 8, kind: input, shape index: {}]   ;;  %s2368_s9 = inlined_call_operand.vmem [shape: f32[1,128], index: 9, kind: input, shape index: {}]   ;;  %s2369_s10 = inlined_call_operand.hbm [shape: f32[1,8,128], index: 10, kind: output, shape index: {}]  }
   0x1   :  { %16 = vsyncpa [#allocation6], 0 }
   0x2   :  { %17 = vsyncpa [#allocation4], 0  ;;  %s2061_s13 = smov [#allocation5]   ;;  %s2062_s15 = smov [#allocation2]  }
   0x3   :  { %s45_s14 = sshll.u32 %s2061_s13, 4  ;;  %s31_s16 = sshll.u32 %s2062_s15, 4  ;;  %s46_s14 = int_to_ptr.vmem [resolvable:$true] %s45_s14  ;;  %s32_s16 = int_to_ptr.vmem [resolvable:$true] %s31_s16 }
   0x4   :  { %s1983_s17 = scalar_lea.vmem %s46_s14, 1024  ;;  %p1988_p1 = scmp.lt.s32.totalorder %s46_s14, %s46_s14 }
   0x5   :  { %p1984_p0 = scmp.ne.s32.totalorder %s46_s14, %s1983_s17  ;;  %p1989_p2 = scmp.lt.s32.totalorder %s1983_s17, %s1983_s17 }
   0x7   :  { %p1990_p3 = por %p1989_p2, %p1988_p1 }
   0x9   :  { %p1991_p4 = pnand %p1990_p3, %p1984_p0 }
   0xb   :  { %1994 = shalt.err (!%p1991_p4)
}
   0xc   :  { %s2063_s18 = smov 64   ;;  %s2064_s19 = smov 4  }
   0xd   :  { %51 = dma.hbm_to_vmem [thread:$0]  %s2365_s6, 1024, %s46_s14, [#allocation6], %s2063_s18, %s2063_s18, %s2064_s19  }
   0xe   :  { %s2003_s22 = scalar_lea.vmem %s32_s16, 1024  ;;  %p2008_p6 = scmp.lt.s32.totalorder %s32_s16, %s32_s16 }
   0xf   :  { %p2004_p5 = scmp.ne.s32.totalorder %s32_s16, %s2003_s22  ;;  %p2009_p7 = scmp.lt.s32.totalorder %s2003_s22, %s2003_s22 }
  0x11   :  { %p2010_p8 = por %p2009_p7, %p2008_p6 }
  0x13   :  { %p2011_p9 = pnand %p2010_p8, %p2004_p5 }
  0x15   :  { %2014 = shalt.err (!%p2011_p9)
}
  0x16   :  { %37 = dma.hbm_to_vmem [thread:$0]  %s2363_s4, 1024, %s32_s16, [#allocation3], %s2063_s18, %s2063_s18, %s2064_s19  }
  0x17   :  { %s2065_s25 = smov [#allocation7]  }
  0x18   :  { %s59_s26 = sshll.u32 %s2065_s25, 4  ;;  %s60_s26 = int_to_ptr.vmem [resolvable:$true] %s59_s26 }
  0x19   :  { %s2023_s27 = scalar_lea.vmem %s60_s26, 1024  ;;  %p2028_p11 = scmp.lt.s32.totalorder %s60_s26, %s60_s26 }
  0x1a   :  { %p2024_p10 = scmp.ne.s32.totalorder %s60_s26, %s2023_s27  ;;  %p2029_p12 = scmp.lt.s32.totalorder %s2023_s27, %s2023_s27 }
  0x1c   :  { %p2030_p13 = por %p2029_p12, %p2028_p11 }
  0x1e   :  { %p2031_p0 = pnand %p2030_p13, %p2024_p10 }
  0x20   :  { %2034 = shalt.err (!%p2031_p0)
}
  0x21   :  { %65 = dma.hbm_to_vmem [thread:$0]  %s2367_s8, 1024, %s60_s26, [#allocation6], %s2063_s18, %s2063_s18, %s2064_s19  }
  0x22   :  { %2055 = dma.done.wait [#allocation3], 1024  }
  0x23   :  { %2056 = vsyncadd [#allocation3], 4294966272 }
  0x24   :  { %2057 = dma.done.wait [#allocation6], 2048  }
  0x25   :  { %2058 = vsyncadd [#allocation6], 4294965248  ;;  %v2066_v0 = vmov 0.0   ;;  %vm2067_vm0 = vmmov 0   ;;  %v1931_v1 = vld [vmem:[%s2360_s1] sm:$0xff]   ;;  %v1932_v2 = vld [vmem:[%s2360_s1 + $0x8] sm:$0xff]  }
  0x26   :  { %1733 = vmatprep.subr.bf16.mxu0 %v2066_v0  ;;  %1739 = vmatprep.subr.bf16.mxu1 %v2066_v0  ;;  %v2148_v3 = vld [vmem:[%s2359_s0] sm:$0xff]   ;;  %vm121_vm1 = vcmask 130048   ;;  %v2153_v4 = vld [vmem:[%s2359_s0 + $0x8] sm:$0xff]   ;;  %v1935_v5 = vld [vmem:[%s2360_s1 + $0x10] sm:$0xff]   ;;  %vm592_vm2 = vcmask 1043456   ;;  %vm567_vm3 = vcmask 64512  }
  0x27   :  { %1735 = vmatprep.mubr.msk.bf16.mxu0 %vm2067_vm0, %v2066_v0  ;;  %1741 = vmatprep.mubr.msk.bf16.mxu1 %vm2067_vm0, %v2066_v0  ;;  %v1936_v6 = vld [vmem:[%s2360_s1 + $0x18] sm:$0xff]   ;;  %v2172_v7 = vld [vmem:[%s2359_s0 + $0x10] sm:$0xff]   ;;  %v1939_v9 = vld [vmem:[%s2360_s1 + $0x20] sm:$0xff]   ;;  %vm1349_vm4 = vcmask 1041409   ;;  %vm1351_vm5 = vcmask 1042434   ;;  %vm1353_vm6 = vcmask 1043459  }
  0x28   :  { %1734 = vmatpush3.bf16.msra.mxu0 %v1931_v1  ;;  %1740 = vmatpush3.bf16.msra.mxu1 %v1932_v2  ;;  %v2180_v8 = vld [vmem:[%s2359_s0 + $0x18] sm:$0xff]   ;;  %v1940_v10 = vld [vmem:[%s2360_s1 + $0x28] sm:$0xff]   ;;  %v2198_v11 = vld [vmem:[%s2359_s0 + $0x20] sm:$0xff]   ;;  %vm1355_vm7 = vcmask 1044484   ;;  %vm1357_vm8 = vcmask 1045509   ;;  %vm1359_vm9 = vcmask 1046534  }
  0x29   :  { %1745 = vmatprep.subr.bf16.mxu0 %v2066_v0  ;;  %1751 = vmatprep.subr.bf16.mxu1 %v2066_v0  ;;  %v2205_v12 = vld [vmem:[%s2359_s0 + $0x28] sm:$0xff]   ;;  %v1943_v13 = vld [vmem:[%s2360_s1 + $0x30] sm:$0xff]   ;;  %v1944_v14 = vld [vmem:[%s2360_s1 + $0x38] sm:$0xff]   ;;  %vm1361_vm10 = vcmask 1047559  }
  0x2a   :  { %v2224_v15 = vld [vmem:[%s2359_s0 + $0x30] sm:$0xff]   ;;  %v2231_v16 = vld [vmem:[%s2359_s0 + $0x38] sm:$0xff]   ;;  %v559_v17 = vld [vmem:[%s2361_s2] sm:$0xf] }
  0x2b   :  { %1736 = vmatmul.mubr.msk.bf16.vlgmr.msra.gmra.mxu0 %vm121_vm1, %v2148_v3  ;;  %1742 = vmatmul.mubr.msk.bf16.vlgmr.msra.gmra.mxu1 %vm121_vm1, %v2153_v4  ;;  %v594_v18 = vsel %vm592_vm2, %v559_v17, 0  ;;  %v2257_v61 = vld [vmem:[%s2362_s3] ss:$0 sm:$0xff] }
  0x2c   :  { %1746 = vmatpush3.bf16.msra.mxu0 %v1935_v5  ;;  %1752 = vmatpush3.bf16.msra.mxu1 %v1936_v6 }
  0x2d   :  { %1747 = vmatprep.mubr.msk.bf16.mxu0 %vm2067_vm0, %v2066_v0  ;;  %1753 = vmatprep.mubr.msk.bf16.mxu1 %vm2067_vm0, %v2066_v0 }
  0x2e   :  { %1757 = vmatprep.subr.bf16.mxu0 %v2066_v0  ;;  %1763 = vmatprep.subr.bf16.mxu1 %v2066_v0 }
  0x33   :  { %1748 = vmatmul.mubr.msk.bf16.vlgmr.msra.gmra.mxu0 %vm121_vm1, %v2172_v7  ;;  %1754 = vmatmul.mubr.msk.bf16.vlgmr.msra.gmra.mxu1 %vm121_vm1, %v2180_v8 }
  0x34   :  { %1758 = vmatpush3.bf16.msra.mxu0 %v1939_v9  ;;  %1764 = vmatpush3.bf16.msra.mxu1 %v1940_v10 }
  0x35   :  { %1759 = vmatprep.mubr.msk.bf16.mxu0 %vm2067_vm0, %v2066_v0  ;;  %1765 = vmatprep.mubr.msk.bf16.mxu1 %vm2067_vm0, %v2066_v0 }
  0x36   :  { %1769 = vmatprep.subr.bf16.mxu0 %v2066_v0  ;;  %1775 = vmatprep.subr.bf16.mxu1 %v2066_v0 }
  0x3b   :  { %1760 = vmatmul.mubr.msk.bf16.vlgmr.msra.gmra.mxu0 %vm121_vm1, %v2198_v11  ;;  %1766 = vmatmul.mubr.msk.bf16.vlgmr.msra.gmra.mxu1 %vm121_vm1, %v2205_v12 }
  0x3c   :  { %1770 = vmatpush3.bf16.msra.mxu0 %v1943_v13  ;;  %1776 = vmatpush3.bf16.msra.mxu1 %v1944_v14 }
  0x3d   :  { %1771 = vmatprep.mubr.msk.bf16.mxu0 %vm2067_vm0, %v2066_v0  ;;  %1777 = vmatprep.mubr.msk.bf16.mxu1 %vm2067_vm0, %v2066_v0 }
  0x3e   :  { %1921 = vmatprep.subr.msk.bf16.mxu0 %vm592_vm2, %v559_v17  ;;  %1922 = vmatprep.subr.msk.bf16.mxu1 %vm592_vm2, %v559_v17 }
  0x43   :  { %1772 = vmatmul.mubr.msk.bf16.vlgmr.msra.gmra.mxu0 %vm121_vm1, %v2224_v15  ;;  %1778 = vmatmul.mubr.msk.bf16.vlgmr.msra.gmra.mxu1 %vm121_vm1, %v2231_v16 }
  0x44   :  { %1782 = vmatpush3.bf16.msra.mxu0 %v594_v18  ;;  %1920 = vmatpush3.bf16.msra.mxu1 %v594_v18 }
  0x45   :  { %1799 = vmatprep.subr.bf16.mxu1 %v2066_v0  ;;  %1823 = vmatprep.subr.bf16.mxu0 %v2066_v0 }
  0xeb   :  { %v159_v19 = vpop.f32.mrf.mxu0  ;;  %v214_v20 = vpop.f32.mrf.mxu1 }
  0xed   :  { %v1737_v21 = vpop.f32.mrf.mxu0  ;;  %v1743_v22 = vpop.f32.mrf.mxu1 }
  0xef   :  { %v162_v23 = vpop.f32.mrf.mxu0  ;;  %v217_v25 = vpop.f32.mrf.mxu1 }
  0xf0   :  { %v551_v24 = vpack.c.bf16 %v162_v23, %v159_v19  ;;  %v552_v26 = vpack.c.bf16 %v217_v25, %v214_v20 }
  0xf1   :  { %v1738_v27 = vpop.f32.mrf.mxu0  ;;  %v1744_v28 = vpop.f32.mrf.mxu1 }
  0xf2   :  { %1783 = vmatprep.mubr.msk.bf16.mxu0 %vm567_vm3, %v551_v24 }
  0xf3   :  { %1784 = vmatmul.mubr.msk.bf16.vlgmr.msra.gmra.mxu0 %vm567_vm3, %v552_v26  ;;  %v269_v29 = vpop.f32.mrf.mxu0  ;;  %v324_v30 = vpop.f32.mrf.mxu1 }
  0xf5   :  { %v1749_v31 = vpop.f32.mrf.mxu0  ;;  %v1755_v32 = vpop.f32.mrf.mxu1 }
  0xf7   :  { %v272_v33 = vpop.f32.mrf.mxu0  ;;  %v327_v35 = vpop.f32.mrf.mxu1 }
  0xf8   :  { %v553_v34 = vpack.c.bf16 %v272_v33, %v269_v29  ;;  %v554_v36 = vpack.c.bf16 %v327_v35, %v324_v30 }
  0xf9   :  { %v1750_v37 = vpop.f32.mrf.mxu0  ;;  %v1756_v38 = vpop.f32.mrf.mxu1 }
  0xfa   :  { %1787 = vmatprep.mubr.msk.bf16.mxu0 %vm567_vm3, %v553_v34 }
  0xfb   :  { %v379_v39 = vpop.f32.mrf.mxu0  ;;  %1788 = vmatmul.mubr.msk.bf16.gmra.mxu0 %vm567_vm3, %v554_v36  ;;  %v434_v40 = vpop.f32.mrf.mxu1 }
  0xfc   :  { %1825 = vmatprep.mubr.msk.bf16.mxu0 %vm2067_vm0, %v2066_v0 }
  0xfd   :  { %v1761_v41 = vpop.f32.mrf.mxu0  ;;  %v1767_v42 = vpop.f32.mrf.mxu1 }
  0xff   :  { %v382_v43 = vpop.f32.mrf.mxu0  ;;  %v437_v45 = vpop.f32.mrf.mxu1 }
 0x100   :  { %v555_v44 = vpack.c.bf16 %v382_v43, %v379_v39  ;;  %v556_v46 = vpack.c.bf16 %v437_v45, %v434_v40 }
 0x101   :  { %v1762_v47 = vpop.f32.mrf.mxu0  ;;  %v1768_v48 = vpop.f32.mrf.mxu1 }
 0x102   :  { %1791 = vmatprep.mubr.msk.bf16.mxu1 %vm567_vm3, %v555_v44 }
 0x103   :  { %1792 = vmatmul.mubr.msk.bf16.vlgmr.msra.gmra.mxu1 %vm567_vm3, %v556_v46  ;;  %v489_v49 = vpop.f32.mrf.mxu0  ;;  %v544_v50 = vpop.f32.mrf.mxu1 }
 0x105   :  { %v1773_v51 = vpop.f32.mrf.mxu0  ;;  %v1779_v52 = vpop.f32.mrf.mxu1 }
 0x107   :  { %v492_v53 = vpop.f32.mrf.mxu0  ;;  %v547_v55 = vpop.f32.mrf.mxu1 }
 0x108   :  { %v557_v54 = vpack.c.bf16 %v492_v53, %v489_v49  ;;  %v558_v56 = vpack.c.bf16 %v547_v55, %v544_v50  ;;  %v1947_v50 = vld [vmem:[#allocation2 + $0x38] sm:$0xff]   ;;  %v1948_v55 = vld [vmem:[#allocation2 + $0x30] sm:$0xff]  }
 0x109   :  { %v1774_v57 = vpop.f32.mrf.mxu0  ;;  %v1780_v58 = vpop.f32.mrf.mxu1 }
 0x10a   :  { %1795 = vmatprep.mubr.msk.bf16.mxu1 %vm567_vm3, %v557_v54  ;;  %v1949_v58 = vld [vmem:[#allocation2 + $0x28] sm:$0xff]  }
 0x10b   :  { %1796 = vmatmul.mubr.msk.bf16.gmra.mxu1 %vm567_vm3, %v558_v56 }
 0x10c   :  { %1801 = vmatprep.mubr.msk.bf16.mxu1 %vm2067_vm0, %v2066_v0 }
 0x1b3   :  { %v1785_v59 = vpop.f32.mrf.mxu0 }
 0x1b4   :  { %v639_v9 = vadd.f32 %v1785_v59, %v2257_v61 }
 0x1b5   :  { %v630_v60 = vpop.f32.mrf.mxu0 }
 0x1b6   :  { %v631_v63 = vadd.f32 %v2257_v61, %v630_v60  ;;  %v695_v20 = vmax.f32 %v639_v9, 0.0  ;;  %v1950_v60 = vld [vmem:[#allocation2 + $0x20] sm:$0xff]  }
 0x1b7   :  { %v1786_v62 = vpop.f32.mrf.mxu0 }
 0x1b8   :  { %v642_v2 = vadd.f32 %v1786_v62, %v2257_v61  ;;  %v693_v10 = vmax.f32 %v631_v63, 0.0 }
 0x1b9   :  { %v633_v1 = vpop.f32.mrf.mxu0 }
 0x1ba   :  { %v634_v5 = vadd.f32 %v2257_v61, %v633_v1  ;;  %v696_v17 = vmax.f32 %v642_v2, 0.0 }
 0x1bb   :  { %v1789_v6 = vpop.f32.mrf.mxu0 }
 0x1bc   :  { %v694_v13 = vmax.f32 %v634_v5, 0.0  ;;  %v710_v22 = vpack.c.bf16 %v696_v17, %v695_v20  ;;  %v655_v31 = vadd.f32 %v1789_v6, %v2257_v61 }
 0x1bd   :  { %v646_v14 = vpop.f32.mrf.mxu0 }
 0x1be   :  { %v709_v18 = vpack.c.bf16 %v694_v13, %v693_v10  ;;  %v647_v25 = vadd.f32 %v2257_v61, %v646_v14  ;;  %v699_v38 = vmax.f32 %v655_v31, 0.0 }
 0x1bf   :  { %v1790_v19 = vpop.f32.mrf.mxu0 }
 0x1c0   :  { %1800 = vmatpush3.bf16.msra.mxu1 %v709_v18  ;;  %v697_v30 = vmax.f32 %v647_v25, 0.0  ;;  %v658_v32 = vadd.f32 %v1790_v19, %v2257_v61 }
 0x1c1   :  { %1805 = vmatprep.subr.bf16.mxu1 %v2066_v0  ;;  %v649_v21 = vpop.f32.mrf.mxu0 }
 0x1c2   :  { %v650_v23 = vadd.f32 %v2257_v61, %v649_v21  ;;  %v700_v39 = vmax.f32 %v658_v32, 0.0 }
 0x1c3   :  { %1802 = vmatmul.mubr.msk.bf16.vlgmr.msra.gmra.mxu1 %vm121_vm1, %v2148_v3  ;;  %v1793_v24 = vpop.f32.mrf.mxu1 }
 0x1c4   :  { %1806 = vmatpush3.bf16.msra.mxu1 %v710_v22  ;;  %1807 = vmatprep.mubr.msk.bf16.mxu1 %vm2067_vm0, %v2066_v0  ;;  %v698_v27 = vmax.f32 %v650_v23, 0.0  ;;  %v712_v44 = vpack.c.bf16 %v700_v39, %v699_v38 }
 0x1c5   :  { %v662_v26 = vpop.f32.mrf.mxu1  ;;  %1811 = vmatprep.subr.bf16.mxu1 %v2066_v0 }
 0x1c6   :  { %v663_v28 = vadd.f32 %v2257_v61, %v662_v26  ;;  %v711_v33 = vpack.c.bf16 %v698_v27, %v697_v30 }
 0x1c7   :  { %v1794_v29 = vpop.f32.mrf.mxu1 }
 0x1c8   :  { %v701_v34 = vmax.f32 %v663_v28, 0.0  ;;  %v674_v46 = vadd.f32 %v1794_v29, %v2257_v61 }
 0x1c9   :  { %v665_v3 = vpop.f32.mrf.mxu1 }
 0x1ca   :  { %v666_v35 = vadd.f32 %v2257_v61, %v665_v3  ;;  %v704_v52 = vmax.f32 %v674_v46, 0.0  ;;  %v1957_v46 = vld [vmem:[#allocation5 + $0x28] sm:$0xff]  }
 0x1cb   :  { %1808 = vmatmul.mubr.msk.bf16.vlgmr.msra.gmra.mxu1 %vm121_vm1, %v2153_v4  ;;  %v1797_v36 = vpop.f32.mrf.mxu1  ;;  %v671_v4 = vadd.f32 %v1793_v24, %v2257_v61 }
 0x1cc   :  { %1812 = vmatpush3.bf16.msra.mxu1 %v711_v33  ;;  %v702_v37 = vmax.f32 %v666_v35, 0.0  ;;  %1813 = vmatprep.mubr.msk.bf16.mxu1 %vm2067_vm0, %v2066_v0  ;;  %v687_v54 = vadd.f32 %v1797_v36, %v2257_v61 }
 0x1cd   :  { %1817 = vmatprep.subr.bf16.mxu1 %v2066_v0  ;;  %v678_v40 = vpop.f32.mrf.mxu1  ;;  %v703_v51 = vmax.f32 %v671_v4, 0.0  ;;  %v1956_v4 = vld [vmem:[#allocation5 + $0x30] sm:$0xff]  }
 0x1ce   :  { %v713_v41 = vpack.c.bf16 %v702_v37, %v701_v34  ;;  %v679_v42 = vadd.f32 %v2257_v61, %v678_v40  ;;  %v707_v56 = vmax.f32 %v687_v54, 0.0  ;;  %v1966_v54 = vld [vmem:[#allocation7 + $0x20] sm:$0xff]  }
 0x1cf   :  { %v1798_v43 = vpop.f32.mrf.mxu1 }
 0x1d0   :  { %1824 = vmatpush3.bf16.msra.mxu0 %v713_v41  ;;  %v705_v47 = vmax.f32 %v679_v42, 0.0 }
 0x1d1   :  { %v681_v45 = vpop.f32.mrf.mxu1  ;;  %1835 = vmatprep.subr.bf16.mxu0 %v2066_v0 }
 0x1d2   :  { %v682_v48 = vadd.f32 %v2257_v61, %v681_v45  ;;  %v1955_v45 = vld [vmem:[#allocation5 + $0x38] sm:$0xff]  }
 0x1d3   :  { %1814 = vmatmul.mubr.msk.bf16.vlgmr.msra.gmra.mxu1 %vm121_vm1, %v2172_v7  ;;  %1826 = vmatmul.mubr.msk.bf16.vlgmr.msra.gmra.mxu0 %vm121_vm1, %v2198_v11  ;;  %v714_v7 = vpack.c.bf16 %v704_v52, %v703_v51  ;;  %v690_v11 = vadd.f32 %v1798_v43, %v2257_v61  ;;  %v1954_v61 = vld [vmem:[#allocation2] sm:$0xff]   ;;  %v1963_v52 = vld [vmem:[#allocation7 + $0x38] sm:$0xff]  }
 0x1d4   :  { %1818 = vmatpush3.bf16.msra.mxu1 %v712_v44  ;;  %1819 = vmatprep.mubr.msk.bf16.mxu1 %vm2067_vm0, %v2066_v0  ;;  %v706_v49 = vmax.f32 %v682_v48, 0.0  ;;  %v1959_v48 = vld [vmem:[#allocation5 + $0x18] sm:$0xff]   ;;  %v1962_v51 = vld [vmem:[#allocation5] sm:$0xff]  }
 0x1d5   :  { %1829 = vmatprep.subr.bf16.mxu1 %v2066_v0  ;;  %1837 = vmatprep.mubr.msk.bf16.mxu0 %vm2067_vm0, %v2066_v0  ;;  %v708_v57 = vmax.f32 %v690_v11, 0.0  ;;  %v1967_v11 = vld [vmem:[#allocation7 + $0x18] sm:$0xff]  }
 0x1d6   :  { %v715_v53 = vpack.c.bf16 %v706_v49, %v705_v47  ;;  %v1958_v47 = vld [vmem:[#allocation5 + $0x20] sm:$0xff]   ;;  %v1960_v49 = vld [vmem:[#allocation5 + $0x10] sm:$0xff]  }
 0x1d7   :  { %v716_v59 = vpack.c.bf16 %v708_v57, %v707_v56 }
 0x1d8   :  { %1836 = vmatpush3.bf16.msra.mxu0 %v715_v53  ;;  %v1964_v53 = vld [vmem:[#allocation7 + $0x30] sm:$0xff]  }
 0x1d9   :  { %1847 = vmatprep.subr.bf16.mxu0 %v1947_v50 }
 0x1db   :  { %1820 = vmatmul.mubr.msk.bf16.vlgmr.msra.gmra.mxu1 %vm121_vm1, %v2180_v8  ;;  %1838 = vmatmul.mubr.msk.bf16.vlgmr.msra.gmra.mxu0 %vm121_vm1, %v2224_v15  ;;  %v1951_v8 = vld [vmem:[#allocation2 + $0x18] sm:$0xff]   ;;  %v1952_v15 = vld [vmem:[#allocation2 + $0x10] sm:$0xff]  }
 0x1dc   :  { %1830 = vmatpush3.bf16.msra.mxu1 %v714_v7  ;;  %1831 = vmatprep.mubr.msk.bf16.mxu1 %vm2067_vm0, %v2066_v0  ;;  %v1965_v7 = vld [vmem:[#allocation7 + $0x28] sm:$0xff]  }
 0x1dd   :  { %1841 = vmatprep.subr.bf16.mxu1 %v2066_v0  ;;  %1848 = vmatpush3.bf16.msra.mxu0 %v1947_v50  ;;  %v1961_v50 = vld [vmem:[#allocation5 + $0x8] sm:$0xff]  }
 0x1de   :  { %1849 = vmatprep.subr.bf16.mxu0 %v1948_v55 }
 0x1e1   :  { %1850 = vmatpush3.bf16.msra.mxu0 %v1948_v55  ;;  %v1968_v55 = vld [vmem:[#allocation7 + $0x10] sm:$0xff]  }
 0x1e2   :  { %1851 = vmatprep.subr.bf16.mxu0 %v1949_v58 }
 0x1e3   :  { %1832 = vmatmul.mubr.msk.bf16.vlgmr.msra.gmra.mxu1 %vm121_vm1, %v2205_v12  ;;  %v1953_v12 = vld [vmem:[#allocation2 + $0x8] sm:$0xff]  }
 0x1e4   :  { %1842 = vmatpush3.bf16.msra.mxu1 %v716_v59  ;;  %1843 = vmatprep.mubr.msk.bf16.mxu1 %vm2067_vm0, %v2066_v0  ;;  %v2331_v59 = vld [vmem:[%s2364_s5] ss:$0 sm:$0xff] }
 0x1e5   :  { %1852 = vmatpush3.bf16.msra.mxu0 %v1949_v58  ;;  %1879 = vmatprep.subr.bf16.mxu1 %v2066_v0 }
 0x1e6   :  { %1853 = vmatprep.subr.bf16.mxu0 %v1950_v60 }
 0x1e9   :  { %1854 = vmatpush3.bf16.msra.mxu0 %v1950_v60 }
 0x1ea   :  { %1855 = vmatprep.subr.bf16.mxu0 %v1951_v8 }
 0x1eb   :  { %1844 = vmatmul.mubr.msk.bf16.vlgmr.msra.gmra.mxu1 %vm121_vm1, %v2231_v16 }
 0x1ec   :  { %1895 = vmatprep.mubr.msk.bf16.mxu1 %vm2067_vm0, %v2066_v0  ;;  %1880 = vmatpush3.bf16.msra.mxu1 %v1955_v45 }
 0x1ed   :  { %1856 = vmatpush3.bf16.msra.mxu0 %v1951_v8  ;;  %1881 = vmatprep.subr.bf16.mxu1 %v2066_v0 }
 0x1ee   :  { %1857 = vmatprep.subr.bf16.mxu0 %v1952_v15 }
 0x1f0   :  { %1882 = vmatpush3.bf16.msra.mxu1 %v1956_v4 }
 0x1f1   :  { %1858 = vmatpush3.bf16.msra.mxu0 %v1952_v15  ;;  %1883 = vmatprep.subr.bf16.mxu1 %v2066_v0 }
 0x1f2   :  { %1859 = vmatprep.subr.bf16.mxu0 %v1953_v12 }
 0x1f4   :  { %1884 = vmatpush3.bf16.msra.mxu1 %v1957_v46 }
 0x1f5   :  { %1860 = vmatpush3.bf16.msra.mxu0 %v1953_v12  ;;  %1885 = vmatprep.subr.bf16.mxu1 %v2066_v0 }
 0x1f6   :  { %1861 = vmatprep.subr.bf16.mxu0 %v1954_v61 }
 0x1f8   :  { %1886 = vmatpush3.bf16.msra.mxu1 %v1958_v47 }
 0x1f9   :  { %1862 = vmatpush3.bf16.msra.mxu0 %v1954_v61  ;;  %1887 = vmatprep.subr.bf16.mxu1 %v2066_v0 }
 0x1fa   :  { %1899 = vmatprep.subr.bf16.mxu0 %v2066_v0 }
 0x1fc   :  { %1888 = vmatpush3.bf16.msra.mxu1 %v1959_v48 }
 0x1fd   :  { %1889 = vmatprep.subr.bf16.mxu1 %v2066_v0 }
 0x200   :  { %1890 = vmatpush3.bf16.msra.mxu1 %v1960_v49 }
 0x201   :  { %1891 = vmatprep.subr.bf16.mxu1 %v2066_v0 }
 0x204   :  { %1892 = vmatpush3.bf16.msra.mxu1 %v1961_v50 }
 0x205   :  { %1893 = vmatprep.subr.bf16.mxu1 %v2066_v0 }
 0x208   :  { %1894 = vmatpush3.bf16.msra.mxu1 %v1962_v51 }
 0x283   :  { %v751_v62 = vpop.f32.mrf.mxu1 }
 0x285   :  { %v1803_v63 = vpop.f32.mrf.mxu1 }
 0x287   :  { %v754_v1 = vpop.f32.mrf.mxu1 }
 0x288   :  { %v1045_v2 = vpack.c.bf16 %v754_v1, %v751_v62 }
 0x289   :  { %v1804_v16 = vpop.f32.mrf.mxu1 }
 0x28a   :  { %1863 = vmatprep.mubr.bf16.mxu0 %v1045_v2 }
 0x28b   :  { %v792_v5 = vpop.f32.mrf.mxu1 }
 0x28d   :  { %v1809_v6 = vpop.f32.mrf.mxu1 }
 0x28f   :  { %v795_v9 = vpop.f32.mrf.mxu1 }
 0x290   :  { %v1046_v10 = vpack.c.bf16 %v795_v9, %v792_v5 }
 0x291   :  { %v1810_v13 = vpop.f32.mrf.mxu1 }
 0x292   :  { %1864 = vmatmul.mubr.bf16.vlgmr.msra.gmra.mxu0 %v1046_v10 }
 0x293   :  { %v833_v14 = vpop.f32.mrf.mxu1  ;;  %v915_v17 = vpop.f32.mrf.mxu0  ;;  %1900 = vmatpush3.bf16.msra.mxu0 %v1963_v52 }
 0x294   :  { %1901 = vmatprep.subr.bf16.mxu0 %v2066_v0 }
 0x295   :  { %v1815_v18 = vpop.f32.mrf.mxu1  ;;  %v1827_v19 = vpop.f32.mrf.mxu0 }
 0x297   :  { %v836_v20 = vpop.f32.mrf.mxu1  ;;  %v918_v21 = vpop.f32.mrf.mxu0  ;;  %1902 = vmatpush3.bf16.msra.mxu0 %v1964_v53 }
 0x298   :  { %v1047_v22 = vpack.c.bf16 %v836_v20, %v833_v14  ;;  %v1049_v30 = vpack.c.bf16 %v918_v21, %v915_v17  ;;  %1903 = vmatprep.subr.bf16.mxu0 %v2066_v0 }
 0x299   :  { %v1816_v23 = vpop.f32.mrf.mxu1  ;;  %v1828_v24 = vpop.f32.mrf.mxu0 }
 0x29a   :  { %1867 = vmatprep.mubr.bf16.mxu0 %v1047_v22 }
 0x29b   :  { %v874_v25 = vpop.f32.mrf.mxu1  ;;  %v997_v26 = vpop.f32.mrf.mxu0  ;;  %1904 = vmatpush3.bf16.msra.mxu0 %v1965_v7 }
 0x29c   :  { %1905 = vmatprep.subr.bf16.mxu0 %v2066_v0 }
 0x29d   :  { %v1821_v27 = vpop.f32.mrf.mxu1  ;;  %v1839_v28 = vpop.f32.mrf.mxu0 }
 0x29f   :  { %v877_v29 = vpop.f32.mrf.mxu1  ;;  %v1000_v31 = vpop.f32.mrf.mxu0  ;;  %1906 = vmatpush3.bf16.msra.mxu0 %v1966_v54 }
 0x2a0   :  { %v1048_v32 = vpack.c.bf16 %v877_v29, %v874_v25  ;;  %v1051_v37 = vpack.c.bf16 %v1000_v31, %v997_v26  ;;  %1907 = vmatprep.subr.bf16.mxu0 %v2066_v0 }
 0x2a1   :  { %v1822_v3 = vpop.f32.mrf.mxu1  ;;  %v1840_v33 = vpop.f32.mrf.mxu0 }
 0x2a2   :  { %1868 = vmatmul.mubr.bf16.gmra.mxu0 %v1048_v32 }
 0x2a3   :  { %v956_v34 = vpop.f32.mrf.mxu1  ;;  %1871 = vmatprep.mubr.bf16.mxu0 %v1049_v30  ;;  %1908 = vmatpush3.bf16.msra.mxu0 %v1967_v11 }
 0x2a4   :  { %1909 = vmatprep.subr.bf16.mxu0 %v2066_v0 }
 0x2a5   :  { %v1833_v35 = vpop.f32.mrf.mxu1 }
 0x2a7   :  { %v959_v36 = vpop.f32.mrf.mxu1  ;;  %1910 = vmatpush3.bf16.msra.mxu0 %v1968_v55 }
 0x2a8   :  { %v1050_v38 = vpack.c.bf16 %v959_v36, %v956_v34  ;;  %1911 = vmatprep.subr.bf16.mxu0 %v2066_v0 }
 0x2a9   :  { %v1834_v39 = vpop.f32.mrf.mxu1 }
 0x2aa   :  { %1872 = vmatmul.mubr.bf16.gmra.mxu0 %v1050_v38 }
 0x2ab   :  { %v1038_v40 = vpop.f32.mrf.mxu1  ;;  %1875 = vmatprep.mubr.bf16.mxu0 %v1051_v37 }
 0x2ad   :  { %v1845_v41 = vpop.f32.mrf.mxu1 }
 0x2af   :  { %v1041_v42 = vpop.f32.mrf.mxu1 }
 0x2b0   :  { %v1052_v43 = vpack.c.bf16 %v1041_v42, %v1038_v40 }
 0x2b1   :  { %v1846_v44 = vpop.f32.mrf.mxu1 }
 0x2b2   :  { %1876 = vmatmul.mubr.bf16.gmra.mxu0 %v1052_v43 }
 0x2b3   :  { %1915 = vmatprep.mubr.msk.bf16.mxu0 %vm2067_vm0, %v2066_v0 }
 0x352   :  { %v1865_v56 = vpop.f32.mrf.mxu0 }
 0x353   :  { %v1167_v61 = vadd.f32 %v1865_v56, %v2331_v59 }
 0x354   :  { %v1158_v57 = vpop.f32.mrf.mxu0 }
 0x355   :  { %v1159_v12 = vadd.f32 %v2331_v59, %v1158_v57  ;;  %v1223_v2 = vmax.f32 %v1167_v61, 0.0 }
 0x356   :  { %v1866_v58 = vpop.f32.mrf.mxu0 }
 0x357   :  { %v1170_v15 = vadd.f32 %v1866_v58, %v2331_v59  ;;  %v1221_v1 = vmax.f32 %v1159_v12, 0.0 }
 0x358   :  { %v1161_v60 = vpop.f32.mrf.mxu0 }
 0x359   :  { %v1162_v8 = vadd.f32 %v2331_v59, %v1161_v60  ;;  %v1224_v63 = vmax.f32 %v1170_v15, 0.0 }
 0x35b   :  { %v1222_v62 = vmax.f32 %v1162_v8, 0.0  ;;  %v1244_v5 = vadd.f32 %v1224_v63, %v1223_v2 }
 0x35d   :  { %v1237_v16 = vadd.f32 %v1222_v62, %v1221_v1  ;;  %v1245_v14 = vrot.slane %v1244_v5, 4 }
 0x35f   :  { %v1238_v10 = vrot.slane %v1237_v16, 4  ;;  %v1246_v25 = vadd.f32 %v1245_v14, %v1244_v5 }
 0x361   :  { %v1239_v21 = vadd.f32 %v1238_v10, %v1237_v16  ;;  %v1247_v34 = vrot.slane %v1246_v25, 2 }
 0x362   :  { %v1869_v6 = vpop.f32.mrf.mxu0 }
 0x363   :  { %v1183_v13 = vadd.f32 %v1869_v6, %v2331_v59  ;;  %v1240_v31 = vrot.slane %v1239_v21, 2  ;;  %v1248_v45 = vadd.f32 %v1247_v34, %v1246_v25 }
 0x364   :  { %v1174_v9 = vpop.f32.mrf.mxu0 }
 0x365   :  { %v1175_v18 = vadd.f32 %v2331_v59, %v1174_v9  ;;  %v1227_v22 = vmax.f32 %v1183_v13, 0.0  ;;  %v1241_v41 = vadd.f32 %v1240_v31, %v1239_v21  ;;  %v1249_v55 = vrot.slane %v1248_v45, 1 }
 0x366   :  { %v1870_v17 = vpop.f32.mrf.mxu0 }
 0x367   :  { %v1186_v19 = vadd.f32 %v1870_v17, %v2331_v59  ;;  %v1225_v27 = vmax.f32 %v1175_v18, 0.0  ;;  %v1242_v53 = vrot.slane %v1241_v41, 1  ;;  %v1250_v10 = vadd.f32 %v1249_v55, %v1248_v45 }
 0x368   :  { %v1177_v20 = vpop.f32.mrf.mxu0 }
 0x369   :  { %v1228_v23 = vmax.f32 %v1186_v19, 0.0  ;;  %v1178_v24 = vadd.f32 %v2331_v59, %v1177_v20  ;;  %v1243_v63 = vadd.f32 %v1242_v53, %v1241_v41 }
 0x36a   :  { %v1873_v26 = vpop.f32.mrf.mxu0 }
 0x36b   :  { %v1258_v28 = vadd.f32 %v1228_v23, %v1227_v22  ;;  %v1226_v29 = vmax.f32 %v1178_v24, 0.0  ;;  %v1199_v33 = vadd.f32 %v1873_v26, %v2331_v59  ;;  %v1294_v21 = vmul.f32 0.0625, %v1243_v63 }
 0x36c   :  { %v1190_v30 = vpop.f32.mrf.mxu0  ;;  %v1295_v26 = vmul.f32 0.0625, %v1250_v10 }
 0x36d   :  { %v1259_v32 = vrot.slane %v1258_v28, 4  ;;  %v1251_v3 = vadd.f32 %v1226_v29, %v1225_v27  ;;  %v1191_v39 = vadd.f32 %v2331_v59, %v1190_v30  ;;  %v1231_v43 = vmax.f32 %v1199_v33, 0.0 }
 0x36e   :  { %v1874_v35 = vpop.f32.mrf.mxu0 }
 0x36f   :  { %v1260_v36 = vadd.f32 %v1259_v32, %v1258_v28  ;;  %v1252_v37 = vrot.slane %v1251_v3, 4  ;;  %v1202_v38 = vadd.f32 %v1874_v35, %v2331_v59  ;;  %v1229_v50 = vmax.f32 %v1191_v39, 0.0 }
 0x370   :  { %v1193_v40 = vpop.f32.mrf.mxu0  ;;  %v1302_v32 = vpack.c.bf16 %v1294_v21, %v1294_v21  ;;  %v1303_v35 = vpack.c.bf16 %v1295_v26, %v1295_v26 }
 0x371   :  { %v1253_v42 = vadd.f32 %v1252_v37, %v1251_v3  ;;  %v1232_v44 = vmax.f32 %v1202_v38, 0.0  ;;  %v1194_v4 = vadd.f32 %v2331_v59, %v1193_v40  ;;  %v1261_v47 = vrot.slane %v1260_v36, 2 }
 0x372   :  { %v1877_v46 = vpop.f32.mrf.mxu0  ;;  %v1341_v41 = vunpack.c.l.b16 %v1302_v32 }
 0x373   :  { %v1254_v48 = vrot.slane %v1253_v42, 2  ;;  %v1272_v49 = vadd.f32 %v1232_v44, %v1231_v43  ;;  %v1230_v51 = vmax.f32 %v1194_v4, 0.0  ;;  %v1215_v11 = vadd.f32 %v1877_v46, %v2331_v59 }
 0x374   :  { %v1206_v52 = vpop.f32.mrf.mxu0  ;;  %v1262_v58 = vadd.f32 %v1261_v47, %v1260_v36  ;;  %v1342_v4 = vunpack.c.l.b16 %v1303_v35 }
 0x375   :  { %v1255_v7 = vadd.f32 %v1254_v48, %v1253_v42  ;;  %v1273_v54 = vrot.slane %v1272_v49, 4  ;;  %v1265_v56 = vadd.f32 %v1230_v51, %v1229_v50  ;;  %v1207_v61 = vadd.f32 %v2331_v59, %v1206_v52 }
 0x376   :  { %v1878_v57 = vpop.f32.mrf.mxu0  ;;  %v1235_v2 = vmax.f32 %v1215_v11, 0.0  ;;  %v1263_v13 = vrot.slane %v1262_v58, 1  ;;  %v1350_v50 = vsel %vm1349_vm4, %v1342_v4, %v1341_v41 }
 0x377   :  { %v1256_v60 = vrot.slane %v1255_v7, 1  ;;  %v1274_v8 = vadd.f32 %v1273_v54, %v1272_v49  ;;  %v1218_v15 = vadd.f32 %v1878_v57, %v2331_v59  ;;  %v1266_v12 = vrot.slane %v1265_v56, 4 }
 0x378   :  { %v1209_v62 = vpop.f32.mrf.mxu0  ;;  %v1233_v19 = vmax.f32 %v1207_v61, 0.0  ;;  %v1264_v27 = vadd.f32 %v1263_v13, %v1262_v58 }
 0x379   :  { %v1275_v1 = vrot.slane %v1274_v8, 2  ;;  %v1236_v16 = vmax.f32 %v1218_v15, 0.0  ;;  %v1257_v5 = vadd.f32 %v1256_v60, %v1255_v7  ;;  %v1267_v6 = vadd.f32 %v1266_v12, %v1265_v56 }
 0x37a   :  { %v1210_v9 = vadd.f32 %v2331_v59, %v1209_v62  ;;  %v1297_v36 = vmul.f32 0.0625, %v1264_v27 }
 0x37b   :  { %v1276_v14 = vadd.f32 %v1275_v1, %v1274_v8  ;;  %v1286_v17 = vadd.f32 %v1236_v16, %v1235_v2  ;;  %v1268_v18 = vrot.slane %v1267_v6, 2  ;;  %v1296_v23 = vmul.f32 0.0625, %v1257_v5  ;;  %v1969_v2 = vld [vmem:[#allocation7 + $0x8] sm:$0xff]   ;;  %v1970_v16 = vld [vmem:[#allocation7] sm:$0xff]  }
 0x37c   :  { %v1234_v20 = vmax.f32 %v1210_v9, 0.0  ;;  %v1305_v46 = vpack.c.bf16 %v1297_v36, %v1297_v36  ;;  %1912 = vmatpush3.bf16.msra.mxu0 %v1969_v2  ;;  %v1639_v5 = vld [vmem:[%s2366_s7] ss:$0 sm:$0xff]  ;;  %s2068_s7 = smov [#allocation8]  }
 0x37d   :  { %v1287_v22 = vrot.slane %v1286_v17, 4  ;;  %v1269_v24 = vadd.f32 %v1268_v18, %v1267_v6  ;;  %v1277_v28 = vrot.slane %v1276_v14, 1  ;;  %v1304_v3 = vpack.c.bf16 %v1296_v23, %v1296_v23  ;;  %1913 = vmatprep.subr.bf16.mxu0 %v2066_v0  ;;  %s1579_s21 = sshll.u32 %s2068_s7, 4  ;;  %s1580_s21 = int_to_ptr.vmem [resolvable:$true] %s1579_s21 }
 0x37e   :  { %v1279_v25 = vadd.f32 %v1234_v20, %v1233_v19  ;;  %v1344_v54 = vunpack.c.l.b16 %v1305_v46  ;;  %v1648_v19 = vld [vmem:[%s2368_s9] ss:$0 sm:$0xff]  ;;  %s2035_s22 = scalar_lea.vmem %s1580_s21, 128  ;;  %p2040_p2 = scmp.lt.s32.totalorder %s1580_s21, %s1580_s21 }
 0x37f   :  { %v1288_v29 = vadd.f32 %v1287_v22, %v1286_v17  ;;  %v1270_v30 = vrot.slane %v1269_v24, 1  ;;  %v1278_v37 = vadd.f32 %v1277_v28, %v1276_v14  ;;  %v1343_v43 = vunpack.c.l.b16 %v1304_v3  ;;  %p2036_p1 = scmp.ne.s32.totalorder %s1580_s21, %s2035_s22  ;;  %p2041_p3 = scmp.lt.s32.totalorder %s2035_s22, %s2035_s22 }
 0x380   :  { %v1280_v31 = vrot.slane %v1279_v25, 4  ;;  %1914 = vmatpush3.bf16.msra.mxu0 %v1970_v16 }
 0x381   :  { %v1289_v59 = vrot.slane %v1288_v29, 2  ;;  %v1271_v33 = vadd.f32 %v1270_v30, %v1269_v24  ;;  %v1299_v47 = vmul.f32 0.0625, %v1278_v37  ;;  %v1352_v52 = vsel %vm1351_vm5, %v1343_v43, %v1350_v50  ;;  %p2042_p4 = por %p2041_p3, %p2040_p2 }
 0x382   :  { %v1281_v34 = vadd.f32 %v1280_v31, %v1279_v25  ;;  %v1354_v57 = vsel %vm1353_vm6, %v1344_v54, %v1352_v52 }
 0x383   :  { %v1290_v38 = vadd.f32 %v1289_v59, %v1288_v29  ;;  %v1298_v39 = vmul.f32 0.0625, %v1271_v33  ;;  %v1307_v11 = vpack.c.bf16 %v1299_v47, %v1299_v47  ;;  %p2043_p5 = pnand %p2042_p4, %p2036_p1 }
 0x384   :  { %v1282_v40 = vrot.slane %v1281_v34, 2 }
 0x385   :  { %v1291_v42 = vrot.slane %v1290_v38, 1  ;;  %v1306_v44 = vpack.c.bf16 %v1298_v39, %v1298_v39  ;;  %v1346_v8 = vunpack.c.l.b16 %v1307_v11 }
 0x386   :  { %v1283_v45 = vadd.f32 %v1282_v40, %v1281_v34 }
 0x387   :  { %v1292_v48 = vadd.f32 %v1291_v42, %v1290_v38  ;;  %v1345_v53 = vunpack.c.l.b16 %v1306_v44 }
 0x388   :  { %v1284_v49 = vrot.slane %v1283_v45, 1 }
 0x389   :  { %v1301_v51 = vmul.f32 0.0625, %v1292_v48  ;;  %v1356_v60 = vsel %vm1355_vm7, %v1345_v53, %v1354_v57 }
 0x38a   :  { %v1285_v7 = vadd.f32 %v1284_v49, %v1283_v45  ;;  %v1358_v61 = vsel %vm1357_vm8, %v1346_v8, %v1356_v60 }
 0x38b   :  { %v1309_v56 = vpack.c.bf16 %v1301_v51, %v1301_v51 }
 0x38c   :  { %v1300_v55 = vmul.f32 0.0625, %v1285_v7 }
 0x38d   :  { %v1348_v12 = vunpack.c.l.b16 %v1309_v56 }
 0x38e   :  { %v1308_v58 = vpack.c.bf16 %v1300_v55, %v1300_v55 }
 0x390   :  { %v1347_v15 = vunpack.c.l.b16 %v1308_v58 }
 0x392   :  { %v1360_v62 = vsel %vm1359_vm9, %v1347_v15, %v1358_v61 }
 0x393   :  { %v1362_v63 = vsel %vm1361_vm10, %v1348_v12, %v1360_v62 }
 0x394   :  { %v1363_v1 = vpack.c.b16 %v1362_v63, %v1362_v63 }
 0x396   :  { %1896 = vmatmul.mubr.bf16.vlgmr.msra.gmra.mxu1 %v1363_v1 }
 0x456   :  { %v1447_v6 = vpop.f32.mrf.mxu1 }
 0x457   :  { %v1448_v9 = vadd.f32 %v1639_v5, %v1447_v6 }
 0x458   :  { %v1897_v10 = vpop.f32.mrf.mxu1 }
 0x459   :  { %v1453_v13 = vmax.f32 %v1448_v9, 0.0 }
 0x45a   :  { %v1450_v14 = vpop.f32.mrf.mxu1 }
 0x45b   :  { %v1454_v17 = vpack.c.bf16 %v1453_v13, %v1453_v13 }
 0x45c   :  { %v1898_v18 = vpop.f32.mrf.mxu1 }
 0x45d   :  { %1916 = vmatmul.mubr.bf16.vlgmr.msra.gmra.mxu0 %v1454_v17 }
 0x51d   :  { %v1560_v20 = vpop.f32.mrf.mxu0 }
 0x51e   :  { %v1561_v0 = vadd.f32 %v1648_v19, %v1560_v20 }
 0x51f   :  { %v1917_v21 = vpop.f32.mrf.mxu0 }
 0x520   :  { %v1657_v22 = vmul.f32 -1.442695, %v1561_v0 }
 0x521   :  { %v1563_v23 = vpop.f32.mrf.mxu0 }
 0x522   :  { %1971 = vpow2.f32 %v1657_v22 }
 0x523   :  { %v1918_v24 = vpop.f32.mrf.mxu0 }
 0x52f   :  { %v1972_v25 = vpop.eup %1971 }
 0x530   :  { %v1569_v26 = vadd.f32 1.0, %v1972_v25 }
 0x532   :  { %1973 = vrcp.f32 %v1569_v26 }
 0x53f   :  { %v1974_v27 = vpop.eup %1973 }
 0x540   :  { %1572 = vst [vmem:[#allocation8] sm:$0xff] %v1974_v27 }
 0x541   :  { %2046 = shalt.err (!%p2043_p5)
}
 0x542   :  { %1582 = dma.vmem_to_hbm [thread:$0]  %s1580_s21, 128, %s2369_s10, [#allocation4]  }
 0x543   :  { %2059 = dma.done.wait [#allocation4], 128  }
 0x544   :  { %2060 = vsyncadd [#allocation4], 4294967168 }
 0x545   :  { %1586 = vsyncpa [#allocation3], 1 }
 0x546   :  { %1587 = vsyncpa [#allocation6], 1 }
 0x547   :  { %1588 = vsyncpa [#allocation4], 1 }

// kernel: tpu_custom_call.1
= control target key start
LH: loop header
LB: loop body
LE: loop exit
PB: predicated region body
PF: predicated region fallthrough
CT: control target
= control target key end

     0   :  { %15 = vsyncpa [#allocation3], 0  ;;  %s2359_s0 = inlined_call_operand.vmem [shape: bf16[8,16,16], index: 0, kind: input, shape index: {}]   ;;  %s2360_s1 = inlined_call_operand.vmem [shape: bf16[8,16,8], index: 1, kind: input, shape index: {}]   ;;  %s2361_s2 = inlined_call_operand.vmem [shape: bf16[8,128], index: 2, kind: input, shape index: {}]   ;;  %s2362_s3 = inlined_call_operand.vmem [shape: f32[1,128], index: 3, kind: input, shape index: {}]   ;;  %s2363_s4 = inlined_call_operand.hbm [shape: bf16[128,128], index: 4, kind: input, shape index: {}]   ;;  %s2364_s5 = inlined_call_operand.vmem [shape: f32[1,128], index: 5, kind: input, shape index: {}]   ;;  %s2365_s6 = inlined_call_operand.hbm [shape: bf16[128,128], index: 6, kind: input, shape index: {}]   ;;  %s2366_s7 = inlined_call_operand.vmem [shape: f32[1,128], index: 7, kind: input, shape index: {}]   ;;  %s2367_s8 = inlined_call_operand.hbm [shape: bf16[128,128], index: 8, kind: input, shape index: {}]   ;;  %s2368_s9 = inlined_call_operand.vmem [shape: f32[1,128], index: 9, kind: input, shape index: {}]   ;;  %s2369_s10 = inlined_call_operand.hbm [shape: f32[1,8,128], index: 10, kind: output, shape index: {}]  }
   0x1   :  { %16 = vsyncpa [#allocation6], 0 }
   0x2   :  { %17 = vsyncpa [#allocation4], 0  ;;  %s2061_s13 = smov [#allocation5]   ;;  %s2062_s15 = smov [#allocation2]  }
   0x3   :  { %s45_s14 = sshll.u32 %s2061_s13, 4  ;;  %s31_s16 = sshll.u32 %s2062_s15, 4  ;;  %s46_s14 = int_to_ptr.vmem [resolvable:$true] %s45_s14  ;;  %s32_s16 = int_to_ptr.vmem [resolvable:$true] %s31_s16 }
   0x4   :  { %s1983_s17 = scalar_lea.vmem %s46_s14, 1024  ;;  %p1988_p1 = scmp.lt.s32.totalorder %s46_s14, %s46_s14 }
   0x5   :  { %p1984_p0 = scmp.ne.s32.totalorder %s46_s14, %s1983_s17  ;;  %p1989_p2 = scmp.lt.s32.totalorder %s1983_s17, %s1983_s17 }
   0x7   :  { %p1990_p3 = por %p1989_p2, %p1988_p1 }
   0x9   :  { %p1991_p4 = pnand %p1990_p3, %p1984_p0 }
   0xb   :  { %1994 = shalt.err (!%p1991_p4)
}
   0xc   :  { %s2063_s18 = smov 64   ;;  %s2064_s19 = smov 4  }
   0xd   :  { %51 = dma.hbm_to_vmem [thread:$0]  %s2365_s6, 1024, %s46_s14, [#allocation6], %s2063_s18, %s2063_s18, %s2064_s19  }
   0xe   :  { %s2003_s22 = scalar_lea.vmem %s32_s16, 1024  ;;  %p2008_p6 = scmp.lt.s32.totalorder %s32_s16, %s32_s16 }
   0xf   :  { %p2004_p5 = scmp.ne.s32.totalorder %s32_s16, %s2003_s22  ;;  %p2009_p7 = scmp.lt.s32.totalorder %s2003_s22, %s2003_s22 }
  0x11   :  { %p2010_p8 = por %p2009_p7, %p2008_p6 }
  0x13   :  { %p2011_p9 = pnand %p2010_p8, %p2004_p5 }
  0x15   :  { %2014 = shalt.err (!%p2011_p9)
}
  0x16   :  { %37 = dma.hbm_to_vmem [thread:$0]  %s2363_s4, 1024, %s32_s16, [#allocation3], %s2063_s18, %s2063_s18, %s2064_s19  }
  0x17   :  { %s2065_s25 = smov [#allocation7]  }
  0x18   :  { %s59_s26 = sshll.u32 %s2065_s25, 4  ;;  %s60_s26 = int_to_ptr.vmem [resolvable:$true] %s59_s26 }
  0x19   :  { %s2023_s27 = scalar_lea.vmem %s60_s26, 1024  ;;  %p2028_p11 = scmp.lt.s32.totalorder %s60_s26, %s60_s26 }
  0x1a   :  { %p2024_p10 = scmp.ne.s32.totalorder %s60_s26, %s2023_s27  ;;  %p2029_p12 = scmp.lt.s32.totalorder %s2023_s27, %s2023_s27 }
  0x1c   :  { %p2030_p13 = por %p2029_p12, %p2028_p11 }
  0x1e   :  { %p2031_p0 = pnand %p2030_p13, %p2024_p10 }
  0x20   :  { %2034 = shalt.err (!%p2031_p0)
}
  0x21   :  { %65 = dma.hbm_to_vmem [thread:$0]  %s2367_s8, 1024, %s60_s26, [#allocation6], %s2063_s18, %s2063_s18, %s2064_s19  }
  0x22   :  { %2055 = dma.done.wait [#allocation3], 1024  }
  0x23   :  { %2056 = vsyncadd [#allocation3], 4294966272 }
  0x24   :  { %2057 = dma.done.wait [#allocation6], 2048  }
  0x25   :  { %2058 = vsyncadd [#allocation6], 4294965248  ;;  %v2066_v0 = vmov 0.0   ;;  %vm2067_vm0 = vmmov 0   ;;  %v1931_v1 = vld [vmem:[%s2360_s1] sm:$0xff]   ;;  %v1932_v2 = vld [vmem:[%s2360_s1 + $0x8] sm:$0xff]  }
  0x26   :  { %1733 = vmatprep.subr.bf16.mxu0 %v2066_v0  ;;  %1739 = vmatprep.subr.bf16.mxu1 %v2066_v0  ;;  %v2148_v3 = vld [vmem:[%s2359_s0] sm:$0xff]   ;;  %vm121_vm1 = vcmask 130048   ;;  %v2153_v4 = vld [vmem:[%s2359_s0 + $0x8] sm:$0xff]   ;;  %v1935_v5 = vld [vmem:[%s2360_s1 + $0x10] sm:$0xff]   ;;  %vm592_vm2 = vcmask 1043456   ;;  %vm567_vm3 = vcmask 64512  }
  0x27   :  { %1735 = vmatprep.mubr.msk.bf16.mxu0 %vm2067_vm0, %v2066_v0  ;;  %1741 = vmatprep.mubr.msk.bf16.mxu1 %vm2067_vm0, %v2066_v0  ;;  %v1936_v6 = vld [vmem:[%s2360_s1 + $0x18] sm:$0xff]   ;;  %v2172_v7 = vld [vmem:[%s2359_s0 + $0x10] sm:$0xff]   ;;  %v1939_v9 = vld [vmem:[%s2360_s1 + $0x20] sm:$0xff]   ;;  %vm1349_vm4 = vcmask 1041409   ;;  %vm1351_vm5 = vcmask 1042434   ;;  %vm1353_vm6 = vcmask 1043459  }
  0x28   :  { %1734 = vmatpush3.bf16.msra.mxu0 %v1931_v1  ;;  %1740 = vmatpush3.bf16.msra.mxu1 %v1932_v2  ;;  %v2180_v8 = vld [vmem:[%s2359_s0 + $0x18] sm:$0xff]   ;;  %v1940_v10 = vld [vmem:[%s2360_s1 + $0x28] sm:$0xff]   ;;  %v2198_v11 = vld [vmem:[%s2359_s0 + $0x20] sm:$0xff]   ;;  %vm1355_vm7 = vcmask 1044484   ;;  %vm1357_vm8 = vcmask 1045509   ;;  %vm1359_vm9 = vcmask 1046534  }
  0x29   :  { %1745 = vmatprep.subr.bf16.mxu0 %v2066_v0  ;;  %1751 = vmatprep.subr.bf16.mxu1 %v2066_v0  ;;  %v2205_v12 = vld [vmem:[%s2359_s0 + $0x28] sm:$0xff]   ;;  %v1943_v13 = vld [vmem:[%s2360_s1 + $0x30] sm:$0xff]   ;;  %v1944_v14 = vld [vmem:[%s2360_s1 + $0x38] sm:$0xff]   ;;  %vm1361_vm10 = vcmask 1047559  }
  0x2a   :  { %v2224_v15 = vld [vmem:[%s2359_s0 + $0x30] sm:$0xff]   ;;  %v2231_v16 = vld [vmem:[%s2359_s0 + $0x38] sm:$0xff]   ;;  %v559_v17 = vld [vmem:[%s2361_s2] sm:$0xf] }
  0x2b   :  { %1736 = vmatmul.mubr.msk.bf16.vlgmr.msra.gmra.mxu0 %vm121_vm1, %v2148_v3  ;;  %1742 = vmatmul.mubr.msk.bf16.vlgmr.msra.gmra.mxu1 %vm121_vm1, %v2153_v4  ;;  %v594_v18 = vsel %vm592_vm2, %v559_v17, 0  ;;  %v2257_v61 = vld [vmem:[%s2362_s3] ss:$0 sm:$0xff] }
  0x2c   :  { %1746 = vmatpush3.bf16.msra.mxu0 %v1935_v5  ;;  %1752 = vmatpush3.bf16.msra.mxu1 %v1936_v6 }
  0x2d   :  { %1747 = vmatprep.mubr.msk.bf16.mxu0 %vm2067_vm0, %v2066_v0  ;;  %1753 = vmatprep.mubr.msk.bf16.mxu1 %vm2067_vm0, %v2066_v0 }
  0x2e   :  { %1757 = vmatprep.subr.bf16.mxu0 %v2066_v0  ;;  %1763 = vmatprep.subr.bf16.mxu1 %v2066_v0 }
  0x33   :  { %1748 = vmatmul.mubr.msk.bf16.vlgmr.msra.gmra.mxu0 %vm121_vm1, %v2172_v7  ;;  %1754 = vmatmul.mubr.msk.bf16.vlgmr.msra.gmra.mxu1 %vm121_vm1, %v2180_v8 }
  0x34   :  { %1758 = vmatpush3.bf16.msra.mxu0 %v1939_v9  ;;  %1764 = vmatpush3.bf16.msra.mxu1 %v1940_v10 }
  0x35   :  { %1759 = vmatprep.mubr.msk.bf16.mxu0 %vm2067_vm0, %v2066_v0  ;;  %1765 = vmatprep.mubr.msk.bf16.mxu1 %vm2067_vm0, %v2066_v0 }
  0x36   :  { %1769 = vmatprep.subr.bf16.mxu0 %v2066_v0  ;;  %1775 = vmatprep.subr.bf16.mxu1 %v2066_v0 }
  0x3b   :  { %1760 = vmatmul.mubr.msk.bf16.vlgmr.msra.gmra.mxu0 %vm121_vm1, %v2198_v11  ;;  %1766 = vmatmul.mubr.msk.bf16.vlgmr.msra.gmra.mxu1 %vm121_vm1, %v2205_v12 }
  0x3c   :  { %1770 = vmatpush3.bf16.msra.mxu0 %v1943_v13  ;;  %1776 = vmatpush3.bf16.msra.mxu1 %v1944_v14 }
  0x3d   :  { %1771 = vmatprep.mubr.msk.bf16.mxu0 %vm2067_vm0, %v2066_v0  ;;  %1777 = vmatprep.mubr.msk.bf16.mxu1 %vm2067_vm0, %v2066_v0 }
  0x3e   :  { %1921 = vmatprep.subr.msk.bf16.mxu0 %vm592_vm2, %v559_v17  ;;  %1922 = vmatprep.subr.msk.bf16.mxu1 %vm592_vm2, %v559_v17 }
  0x43   :  { %1772 = vmatmul.mubr.msk.bf16.vlgmr.msra.gmra.mxu0 %vm121_vm1, %v2224_v15  ;;  %1778 = vmatmul.mubr.msk.bf16.vlgmr.msra.gmra.mxu1 %vm121_vm1, %v2231_v16 }
  0x44   :  { %1782 = vmatpush3.bf16.msra.mxu0 %v594_v18  ;;  %1920 = vmatpush3.bf16.msra.mxu1 %v594_v18 }
  0x45   :  { %1799 = vmatprep.subr.bf16.mxu1 %v2066_v0  ;;  %1823 = vmatprep.subr.bf16.mxu0 %v2066_v0 }
  0xeb   :  { %v159_v19 = vpop.f32.mrf.mxu0  ;;  %v214_v20 = vpop.f32.mrf.mxu1 }
  0xed   :  { %v1737_v21 = vpop.f32.mrf.mxu0  ;;  %v1743_v22 = vpop.f32.mrf.mxu1 }
  0xef   :  { %v162_v23 = vpop.f32.mrf.mxu0  ;;  %v217_v25 = vpop.f32.mrf.mxu1 }
  0xf0   :  { %v551_v24 = vpack.c.bf16 %v162_v23, %v159_v19  ;;  %v552_v26 = vpack.c.bf16 %v217_v25, %v214_v20 }
  0xf1   :  { %v1738_v27 = vpop.f32.mrf.mxu0  ;;  %v1744_v28 = vpop.f32.mrf.mxu1 }
  0xf2   :  { %1783 = vmatprep.mubr.msk.bf16.mxu0 %vm567_vm3, %v551_v24 }
  0xf3   :  { %1784 = vmatmul.mubr.msk.bf16.vlgmr.msra.gmra.mxu0 %vm567_vm3, %v552_v26  ;;  %v269_v29 = vpop.f32.mrf.mxu0  ;;  %v324_v30 = vpop.f32.mrf.mxu1 }
  0xf5   :  { %v1749_v31 = vpop.f32.mrf.mxu0  ;;  %v1755_v32 = vpop.f32.mrf.mxu1 }
  0xf7   :  { %v272_v33 = vpop.f32.mrf.mxu0  ;;  %v327_v35 = vpop.f32.mrf.mxu1 }
  0xf8   :  { %v553_v34 = vpack.c.bf16 %v272_v33, %v269_v29  ;;  %v554_v36 = vpack.c.bf16 %v327_v35, %v324_v30 }
  0xf9   :  { %v1750_v37 = vpop.f32.mrf.mxu0  ;;  %v1756_v38 = vpop.f32.mrf.mxu1 }
  0xfa   :  { %1787 = vmatprep.mubr.msk.bf16.mxu0 %vm567_vm3, %v553_v34 }
  0xfb   :  { %v379_v39 = vpop.f32.mrf.mxu0  ;;  %1788 = vmatmul.mubr.msk.bf16.gmra.mxu0 %vm567_vm3, %v554_v36  ;;  %v434_v40 = vpop.f32.mrf.mxu1 }
  0xfc   :  { %1825 = vmatprep.mubr.msk.bf16.mxu0 %vm2067_vm0, %v2066_v0 }
  0xfd   :  { %v1761_v41 = vpop.f32.mrf.mxu0  ;;  %v1767_v42 = vpop.f32.mrf.mxu1 }
  0xff   :  { %v382_v43 = vpop.f32.mrf.mxu0  ;;  %v437_v45 = vpop.f32.mrf.mxu1 }
 0x100   :  { %v555_v44 = vpack.c.bf16 %v382_v43, %v379_v39  ;;  %v556_v46 = vpack.c.bf16 %v437_v45, %v434_v40 }
 0x101   :  { %v1762_v47 = vpop.f32.mrf.mxu0  ;;  %v1768_v48 = vpop.f32.mrf.mxu1 }
 0x102   :  { %1791 = vmatprep.mubr.msk.bf16.mxu1 %vm567_vm3, %v555_v44 }
 0x103   :  { %1792 = vmatmul.mubr.msk.bf16.vlgmr.msra.gmra.mxu1 %vm567_vm3, %v556_v46  ;;  %v489_v49 = vpop.f32.mrf.mxu0  ;;  %v544_v50 = vpop.f32.mrf.mxu1 }
 0x105   :  { %v1773_v51 = vpop.f32.mrf.mxu0  ;;  %v1779_v52 = vpop.f32.mrf.mxu1 }
 0x107   :  { %v492_v53 = vpop.f32.mrf.mxu0  ;;  %v547_v55 = vpop.f32.mrf.mxu1 }
 0x108   :  { %v557_v54 = vpack.c.bf16 %v492_v53, %v489_v49  ;;  %v558_v56 = vpack.c.bf16 %v547_v55, %v544_v50  ;;  %v1947_v50 = vld [vmem:[#allocation2 + $0x38] sm:$0xff]   ;;  %v1948_v55 = vld [vmem:[#allocation2 + $0x30] sm:$0xff]  }
 0x109   :  { %v1774_v57 = vpop.f32.mrf.mxu0  ;;  %v1780_v58 = vpop.f32.mrf.mxu1 }
 0x10a   :  { %1795 = vmatprep.mubr.msk.bf16.mxu1 %vm567_vm3, %v557_v54  ;;  %v1949_v58 = vld [vmem:[#allocation2 + $0x28] sm:$0xff]  }
 0x10b   :  { %1796 = vmatmul.mubr.msk.bf16.gmra.mxu1 %vm567_vm3, %v558_v56 }
 0x10c   :  { %1801 = vmatprep.mubr.msk.bf16.mxu1 %vm2067_vm0, %v2066_v0 }
 0x1b3   :  { %v1785_v59 = vpop.f32.mrf.mxu0 }
 0x1b4   :  { %v639_v9 = vadd.f32 %v1785_v59, %v2257_v61 }
 0x1b5   :  { %v630_v60 = vpop.f32.mrf.mxu0 }
 0x1b6   :  { %v631_v63 = vadd.f32 %v2257_v61, %v630_v60  ;;  %v695_v20 = vmax.f32 %v639_v9, 0.0  ;;  %v1950_v60 = vld [vmem:[#allocation2 + $0x20] sm:$0xff]  }
 0x1b7   :  { %v1786_v62 = vpop.f32.mrf.mxu0 }
 0x1b8   :  { %v642_v2 = vadd.f32 %v1786_v62, %v2257_v61  ;;  %v693_v10 = vmax.f32 %v631_v63, 0.0 }
 0x1b9   :  { %v633_v1 = vpop.f32.mrf.mxu0 }
 0x1ba   :  { %v634_v5 = vadd.f32 %v2257_v61, %v633_v1  ;;  %v696_v17 = vmax.f32 %v642_v2, 0.0 }
 0x1bb   :  { %v1789_v6 = vpop.f32.mrf.mxu0 }
 0x1bc   :  { %v694_v13 = vmax.f32 %v634_v5, 0.0  ;;  %v710_v22 = vpack.c.bf16 %v696_v17, %v695_v20  ;;  %v655_v31 = vadd.f32 %v1789_v6, %v2257_v61 }
 0x1bd   :  { %v646_v14 = vpop.f32.mrf.mxu0 }
 0x1be   :  { %v709_v18 = vpack.c.bf16 %v694_v13, %v693_v10  ;;  %v647_v25 = vadd.f32 %v2257_v61, %v646_v14  ;;  %v699_v38 = vmax.f32 %v655_v31, 0.0 }
 0x1bf   :  { %v1790_v19 = vpop.f32.mrf.mxu0 }
 0x1c0   :  { %1800 = vmatpush3.bf16.msra.mxu1 %v709_v18  ;;  %v697_v30 = vmax.f32 %v647_v25, 0.0  ;;  %v658_v32 = vadd.f32 %v1790_v19, %v2257_v61 }
 0x1c1   :  { %1805 = vmatprep.subr.bf16.mxu1 %v2066_v0  ;;  %v649_v21 = vpop.f32.mrf.mxu0 }
 0x1c2   :  { %v650_v23 = vadd.f32 %v2257_v61, %v649_v21  ;;  %v700_v39 = vmax.f32 %v658_v32, 0.0 }
 0x1c3   :  { %1802 = vmatmul.mubr.msk.bf16.vlgmr.msra.gmra.mxu1 %vm121_vm1, %v2148_v3  ;;  %v1793_v24 = vpop.f32.mrf.mxu1 }
 0x1c4   :  { %1806 = vmatpush3.bf16.msra.mxu1 %v710_v22  ;;  %1807 = vmatprep.mubr.msk.bf16.mxu1 %vm2067_vm0, %v2066_v0  ;;  %v698_v27 = vmax.f32 %v650_v23, 0.0  ;;  %v712_v44 = vpack.c.bf16 %v700_v39, %v699_v38 }
 0x1c5   :  { %v662_v26 = vpop.f32.mrf.mxu1  ;;  %1811 = vmatprep.subr.bf16.mxu1 %v2066_v0 }
 0x1c6   :  { %v663_v28 = vadd.f32 %v2257_v61, %v662_v26  ;;  %v711_v33 = vpack.c.bf16 %v698_v27, %v697_v30 }
 0x1c7   :  { %v1794_v29 = vpop.f32.mrf.mxu1 }
 0x1c8   :  { %v701_v34 = vmax.f32 %v663_v28, 0.0  ;;  %v674_v46 = vadd.f32 %v1794_v29, %v2257_v61 }
 0x1c9   :  { %v665_v3 = vpop.f32.mrf.mxu1 }
 0x1ca   :  { %v666_v35 = vadd.f32 %v2257_v61, %v665_v3  ;;  %v704_v52 = vmax.f32 %v674_v46, 0.0  ;;  %v1957_v46 = vld [vmem:[#allocation5 + $0x28] sm:$0xff]  }
 0x1cb   :  { %1808 = vmatmul.mubr.msk.bf16.vlgmr.msra.gmra.mxu1 %vm121_vm1, %v2153_v4  ;;  %v1797_v36 = vpop.f32.mrf.mxu1  ;;  %v671_v4 = vadd.f32 %v1793_v24, %v2257_v61 }
 0x1cc   :  { %1812 = vmatpush3.bf16.msra.mxu1 %v711_v33  ;;  %v702_v37 = vmax.f32 %v666_v35, 0.0  ;;  %1813 = vmatprep.mubr.msk.bf16.mxu1 %vm2067_vm0, %v2066_v0  ;;  %v687_v54 = vadd.f32 %v1797_v36, %v2257_v61 }
 0x1cd   :  { %1817 = vmatprep.subr.bf16.mxu1 %v2066_v0  ;;  %v678_v40 = vpop.f32.mrf.mxu1  ;;  %v703_v51 = vmax.f32 %v671_v4, 0.0  ;;  %v1956_v4 = vld [vmem:[#allocation5 + $0x30] sm:$0xff]  }
 0x1ce   :  { %v713_v41 = vpack.c.bf16 %v702_v37, %v701_v34  ;;  %v679_v42 = vadd.f32 %v2257_v61, %v678_v40  ;;  %v707_v56 = vmax.f32 %v687_v54, 0.0  ;;  %v1966_v54 = vld [vmem:[#allocation7 + $0x20] sm:$0xff]  }
 0x1cf   :  { %v1798_v43 = vpop.f32.mrf.mxu1 }
 0x1d0   :  { %1824 = vmatpush3.bf16.msra.mxu0 %v713_v41  ;;  %v705_v47 = vmax.f32 %v679_v42, 0.0 }
 0x1d1   :  { %v681_v45 = vpop.f32.mrf.mxu1  ;;  %1835 = vmatprep.subr.bf16.mxu0 %v2066_v0 }
 0x1d2   :  { %v682_v48 = vadd.f32 %v2257_v61, %v681_v45  ;;  %v1955_v45 = vld [vmem:[#allocation5 + $0x38] sm:$0xff]  }
 0x1d3   :  { %1814 = vmatmul.mubr.msk.bf16.vlgmr.msra.gmra.mxu1 %vm121_vm1, %v2172_v7  ;;  %1826 = vmatmul.mubr.msk.bf16.vlgmr.msra.gmra.mxu0 %vm121_vm1, %v2198_v11  ;;  %v714_v7 = vpack.c.bf16 %v704_v52, %v703_v51  ;;  %v690_v11 = vadd.f32 %v1798_v43, %v2257_v61  ;;  %v1954_v61 = vld [vmem:[#allocation2] sm:$0xff]   ;;  %v1963_v52 = vld [vmem:[#allocation7 + $0x38] sm:$0xff]  }
 0x1d4   :  { %1818 = vmatpush3.bf16.msra.mxu1 %v712_v44  ;;  %1819 = vmatprep.mubr.msk.bf16.mxu1 %vm2067_vm0, %v2066_v0  ;;  %v706_v49 = vmax.f32 %v682_v48, 0.0  ;;  %v1959_v48 = vld [vmem:[#allocation5 + $0x18] sm:$0xff]   ;;  %v1962_v51 = vld [vmem:[#allocation5] sm:$0xff]  }
 0x1d5   :  { %1829 = vmatprep.subr.bf16.mxu1 %v2066_v0  ;;  %1837 = vmatprep.mubr.msk.bf16.mxu0 %vm2067_vm0, %v2066_v0  ;;  %v708_v57 = vmax.f32 %v690_v11, 0.0  ;;  %v1967_v11 = vld [vmem:[#allocation7 + $0x18] sm:$0xff]  }
 0x1d6   :  { %v715_v53 = vpack.c.bf16 %v706_v49, %v705_v47  ;;  %v1958_v47 = vld [vmem:[#allocation5 + $0x20] sm:$0xff]   ;;  %v1960_v49 = vld [vmem:[#allocation5 + $0x10] sm:$0xff]  }
 0x1d7   :  { %v716_v59 = vpack.c.bf16 %v708_v57, %v707_v56 }
 0x1d8   :  { %1836 = vmatpush3.bf16.msra.mxu0 %v715_v53  ;;  %v1964_v53 = vld [vmem:[#allocation7 + $0x30] sm:$0xff]  }
 0x1d9   :  { %1847 = vmatprep.subr.bf16.mxu0 %v1947_v50 }
 0x1db   :  { %1820 = vmatmul.mubr.msk.bf16.vlgmr.msra.gmra.mxu1 %vm121_vm1, %v2180_v8  ;;  %1838 = vmatmul.mubr.msk.bf16.vlgmr.msra.gmra.mxu0 %vm121_vm1, %v2224_v15  ;;  %v1951_v8 = vld [vmem:[#allocation2 + $0x18] sm:$0xff]   ;;  %v1952_v15 = vld [vmem:[#allocation2 + $0x10] sm:$0xff]  }
 0x1dc   :  { %1830 = vmatpush3.bf16.msra.mxu1 %v714_v7  ;;  %1831 = vmatprep.mubr.msk.bf16.mxu1 %vm2067_vm0, %v2066_v0  ;;  %v1965_v7 = vld [vmem:[#allocation7 + $0x28] sm:$0xff]  }
 0x1dd   :  { %1841 = vmatprep.subr.bf16.mxu1 %v2066_v0  ;;  %1848 = vmatpush3.bf16.msra.mxu0 %v1947_v50  ;;  %v1961_v50 = vld [vmem:[#allocation5 + $0x8] sm:$0xff]  }
 0x1de   :  { %1849 = vmatprep.subr.bf16.mxu0 %v1948_v55 }
 0x1e1   :  { %1850 = vmatpush3.bf16.msra.mxu0 %v1948_v55  ;;  %v1968_v55 = vld [vmem:[#allocation7 + $0x10] sm:$0xff]  }
 0x1e2   :  { %1851 = vmatprep.subr.bf16.mxu0 %v1949_v58 }
 0x1e3   :  { %1832 = vmatmul.mubr.msk.bf16.vlgmr.msra.gmra.mxu1 %vm121_vm1, %v2205_v12  ;;  %v1953_v12 = vld [vmem:[#allocation2 + $0x8] sm:$0xff]  }
 0x1e4   :  { %1842 = vmatpush3.bf16.msra.mxu1 %v716_v59  ;;  %1843 = vmatprep.mubr.msk.bf16.mxu1 %vm2067_vm0, %v2066_v0  ;;  %v2331_v59 = vld [vmem:[%s2364_s5] ss:$0 sm:$0xff] }
 0x1e5   :  { %1852 = vmatpush3.bf16.msra.mxu0 %v1949_v58  ;;  %1879 = vmatprep.subr.bf16.mxu1 %v2066_v0 }
 0x1e6   :  { %1853 = vmatprep.subr.bf16.mxu0 %v1950_v60 }
 0x1e9   :  { %1854 = vmatpush3.bf16.msra.mxu0 %v1950_v60 }
 0x1ea   :  { %1855 = vmatprep.subr.bf16.mxu0 %v1951_v8 }
 0x1eb   :  { %1844 = vmatmul.mubr.msk.bf16.vlgmr.msra.gmra.mxu1 %vm121_vm1, %v2231_v16 }
 0x1ec   :  { %1895 = vmatprep.mubr.msk.bf16.mxu1 %vm2067_vm0, %v2066_v0  ;;  %1880 = vmatpush3.bf16.msra.mxu1 %v1955_v45 }
 0x1ed   :  { %1856 = vmatpush3.bf16.msra.mxu0 %v1951_v8  ;;  %1881 = vmatprep.subr.bf16.mxu1 %v2066_v0 }
 0x1ee   :  { %1857 = vmatprep.subr.bf16.mxu0 %v1952_v15 }
 0x1f0   :  { %1882 = vmatpush3.bf16.msra.mxu1 %v1956_v4 }
 0x1f1   :  { %1858 = vmatpush3.bf16.msra.mxu0 %v1952_v15  ;;  %1883 = vmatprep.subr.bf16.mxu1 %v2066_v0 }
 0x1f2   :  { %1859 = vmatprep.subr.bf16.mxu0 %v1953_v12 }
 0x1f4   :  { %1884 = vmatpush3.bf16.msra.mxu1 %v1957_v46 }
 0x1f5   :  { %1860 = vmatpush3.bf16.msra.mxu0 %v1953_v12  ;;  %1885 = vmatprep.subr.bf16.mxu1 %v2066_v0 }
 0x1f6   :  { %1861 = vmatprep.subr.bf16.mxu0 %v1954_v61 }
 0x1f8   :  { %1886 = vmatpush3.bf16.msra.mxu1 %v1958_v47 }
 0x1f9   :  { %1862 = vmatpush3.bf16.msra.mxu0 %v1954_v61  ;;  %1887 = vmatprep.subr.bf16.mxu1 %v2066_v0 }
 0x1fa   :  { %1899 = vmatprep.subr.bf16.mxu0 %v2066_v0 }
 0x1fc   :  { %1888 = vmatpush3.bf16.msra.mxu1 %v1959_v48 }
 0x1fd   :  { %1889 = vmatprep.subr.bf16.mxu1 %v2066_v0 }
 0x200   :  { %1890 = vmatpush3.bf16.msra.mxu1 %v1960_v49 }
 0x201   :  { %1891 = vmatprep.subr.bf16.mxu1 %v2066_v0 }
 0x204   :  { %1892 = vmatpush3.bf16.msra.mxu1 %v1961_v50 }
 0x205   :  { %1893 = vmatprep.subr.bf16.mxu1 %v2066_v0 }
 0x208   :  { %1894 = vmatpush3.bf16.msra.mxu1 %v1962_v51 }
 0x283   :  { %v751_v62 = vpop.f32.mrf.mxu1 }
 0x285   :  { %v1803_v63 = vpop.f32.mrf.mxu1 }
 0x287   :  { %v754_v1 = vpop.f32.mrf.mxu1 }
 0x288   :  { %v1045_v2 = vpack.c.bf16 %v754_v1, %v751_v62 }
 0x289   :  { %v1804_v16 = vpop.f32.mrf.mxu1 }
 0x28a   :  { %1863 = vmatprep.mubr.bf16.mxu0 %v1045_v2 }
 0x28b   :  { %v792_v5 = vpop.f32.mrf.mxu1 }
 0x28d   :  { %v1809_v6 = vpop.f32.mrf.mxu1 }
 0x28f   :  { %v795_v9 = vpop.f32.mrf.mxu1 }
 0x290   :  { %v1046_v10 = vpack.c.bf16 %v795_v9, %v792_v5 }
 0x291   :  { %v1810_v13 = vpop.f32.mrf.mxu1 }
 0x292   :  { %1864 = vmatmul.mubr.bf16.vlgmr.msra.gmra.mxu0 %v1046_v10 }
 0x293   :  { %v833_v14 = vpop.f32.mrf.mxu1  ;;  %v915_v17 = vpop.f32.mrf.mxu0  ;;  %1900 = vmatpush3.bf16.msra.mxu0 %v1963_v52 }
 0x294   :  { %1901 = vmatprep.subr.bf16.mxu0 %v2066_v0 }
 0x295   :  { %v1815_v18 = vpop.f32.mrf.mxu1  ;;  %v1827_v19 = vpop.f32.mrf.mxu0 }
 0x297   :  { %v836_v20 = vpop.f32.mrf.mxu1  ;;  %v918_v21 = vpop.f32.mrf.mxu0  ;;  %1902 = vmatpush3.bf16.msra.mxu0 %v1964_v53 }
 0x298   :  { %v1047_v22 = vpack.c.bf16 %v836_v20, %v833_v14  ;;  %v1049_v30 = vpack.c.bf16 %v918_v21, %v915_v17  ;;  %1903 = vmatprep.subr.bf16.mxu0 %v2066_v0 }
 0x299   :  { %v1816_v23 = vpop.f32.mrf.mxu1  ;;  %v1828_v24 = vpop.f32.mrf.mxu0 }
 0x29a   :  { %1867 = vmatprep.mubr.bf16.mxu0 %v1047_v22 }
 0x29b   :  { %v874_v25 = vpop.f32.mrf.mxu1  ;;  %v997_v26 = vpop.f32.mrf.mxu0  ;;  %1904 = vmatpush3.bf16.msra.mxu0 %v1965_v7 }
 0x29c   :  { %1905 = vmatprep.subr.bf16.mxu0 %v2066_v0 }
 0x29d   :  { %v1821_v27 = vpop.f32.mrf.mxu1  ;;  %v1839_v28 = vpop.f32.mrf.mxu0 }
 0x29f   :  { %v877_v29 = vpop.f32.mrf.mxu1  ;;  %v1000_v31 = vpop.f32.mrf.mxu0  ;;  %1906 = vmatpush3.bf16.msra.mxu0 %v1966_v54 }
 0x2a0   :  { %v1048_v32 = vpack.c.bf16 %v877_v29, %v874_v25  ;;  %v1051_v37 = vpack.c.bf16 %v1000_v31, %v997_v26  ;;  %1907 = vmatprep.subr.bf16.mxu0 %v2066_v0 }
 0x2a1   :  { %v1822_v3 = vpop.f32.mrf.mxu1  ;;  %v1840_v33 = vpop.f32.mrf.mxu0 }
 0x2a2   :  { %1868 = vmatmul.mubr.bf16.gmra.mxu0 %v1048_v32 }
 0x2a3   :  { %v956_v34 = vpop.f32.mrf.mxu1  ;;  %1871 = vmatprep.mubr.bf16.mxu0 %v1049_v30  ;;  %1908 = vmatpush3.bf16.msra.mxu0 %v1967_v11 }
 0x2a4   :  { %1909 = vmatprep.subr.bf16.mxu0 %v2066_v0 }
 0x2a5   :  { %v1833_v35 = vpop.f32.mrf.mxu1 }
 0x2a7   :  { %v959_v36 = vpop.f32.mrf.mxu1  ;;  %1910 = vmatpush3.bf16.msra.mxu0 %v1968_v55 }
 0x2a8   :  { %v1050_v38 = vpack.c.bf16 %v959_v36, %v956_v34  ;;  %1911 = vmatprep.subr.bf16.mxu0 %v2066_v0 }
 0x2a9   :  { %v1834_v39 = vpop.f32.mrf.mxu1 }
 0x2aa   :  { %1872 = vmatmul.mubr.bf16.gmra.mxu0 %v1050_v38 }
 0x2ab   :  { %v1038_v40 = vpop.f32.mrf.mxu1  ;;  %1875 = vmatprep.mubr.bf16.mxu0 %v1051_v37 }
 0x2ad   :  { %v1845_v41 = vpop.f32.mrf.mxu1 }
 0x2af   :  { %v1041_v42 = vpop.f32.mrf.mxu1 }
 0x2b0   :  { %v1052_v43 = vpack.c.bf16 %v1041_v42, %v1038_v40 }
 0x2b1   :  { %v1846_v44 = vpop.f32.mrf.mxu1 }
 0x2b2   :  { %1876 = vmatmul.mubr.bf16.gmra.mxu0 %v1052_v43 }
 0x2b3   :  { %1915 = vmatprep.mubr.msk.bf16.mxu0 %vm2067_vm0, %v2066_v0 }
 0x352   :  { %v1865_v56 = vpop.f32.mrf.mxu0 }
 0x353   :  { %v1167_v61 = vadd.f32 %v1865_v56, %v2331_v59 }
 0x354   :  { %v1158_v57 = vpop.f32.mrf.mxu0 }
 0x355   :  { %v1159_v12 = vadd.f32 %v2331_v59, %v1158_v57  ;;  %v1223_v2 = vmax.f32 %v1167_v61, 0.0 }
 0x356   :  { %v1866_v58 = vpop.f32.mrf.mxu0 }
 0x357   :  { %v1170_v15 = vadd.f32 %v1866_v58, %v2331_v59  ;;  %v1221_v1 = vmax.f32 %v1159_v12, 0.0 }
 0x358   :  { %v1161_v60 = vpop.f32.mrf.mxu0 }
 0x359   :  { %v1162_v8 = vadd.f32 %v2331_v59, %v1161_v60  ;;  %v1224_v63 = vmax.f32 %v1170_v15, 0.0 }
 0x35b   :  { %v1222_v62 = vmax.f32 %v1162_v8, 0.0  ;;  %v1244_v5 = vadd.f32 %v1224_v63, %v1223_v2 }
 0x35d   :  { %v1237_v16 = vadd.f32 %v1222_v62, %v1221_v1  ;;  %v1245_v14 = vrot.slane %v1244_v5, 4 }
 0x35f   :  { %v1238_v10 = vrot.slane %v1237_v16, 4  ;;  %v1246_v25 = vadd.f32 %v1245_v14, %v1244_v5 }
 0x361   :  { %v1239_v21 = vadd.f32 %v1238_v10, %v1237_v16  ;;  %v1247_v34 = vrot.slane %v1246_v25, 2 }
 0x362   :  { %v1869_v6 = vpop.f32.mrf.mxu0 }
 0x363   :  { %v1183_v13 = vadd.f32 %v1869_v6, %v2331_v59  ;;  %v1240_v31 = vrot.slane %v1239_v21, 2  ;;  %v1248_v45 = vadd.f32 %v1247_v34, %v1246_v25 }
 0x364   :  { %v1174_v9 = vpop.f32.mrf.mxu0 }
 0x365   :  { %v1175_v18 = vadd.f32 %v2331_v59, %v1174_v9  ;;  %v1227_v22 = vmax.f32 %v1183_v13, 0.0  ;;  %v1241_v41 = vadd.f32 %v1240_v31, %v1239_v21  ;;  %v1249_v55 = vrot.slane %v1248_v45, 1 }
 0x366   :  { %v1870_v17 = vpop.f32.mrf.mxu0 }
 0x367   :  { %v1186_v19 = vadd.f32 %v1870_v17, %v2331_v59  ;;  %v1225_v27 = vmax.f32 %v1175_v18, 0.0  ;;  %v1242_v53 = vrot.slane %v1241_v41, 1  ;;  %v1250_v10 = vadd.f32 %v1249_v55, %v1248_v45 }
 0x368   :  { %v1177_v20 = vpop.f32.mrf.mxu0 }
 0x369   :  { %v1228_v23 = vmax.f32 %v1186_v19, 0.0  ;;  %v1178_v24 = vadd.f32 %v2331_v59, %v1177_v20  ;;  %v1243_v63 = vadd.f32 %v1242_v53, %v1241_v41 }
 0x36a   :  { %v1873_v26 = vpop.f32.mrf.mxu0 }
 0x36b   :  { %v1258_v28 = vadd.f32 %v1228_v23, %v1227_v22  ;;  %v1226_v29 = vmax.f32 %v1178_v24, 0.0  ;;  %v1199_v33 = vadd.f32 %v1873_v26, %v2331_v59  ;;  %v1294_v21 = vmul.f32 0.0625, %v1243_v63 }
 0x36c   :  { %v1190_v30 = vpop.f32.mrf.mxu0  ;;  %v1295_v26 = vmul.f32 0.0625, %v1250_v10 }
 0x36d   :  { %v1259_v32 = vrot.slane %v1258_v28, 4  ;;  %v1251_v3 = vadd.f32 %v1226_v29, %v1225_v27  ;;  %v1191_v39 = vadd.f32 %v2331_v59, %v1190_v30  ;;  %v1231_v43 = vmax.f32 %v1199_v33, 0.0 }
 0x36e   :  { %v1874_v35 = vpop.f32.mrf.mxu0 }
 0x36f   :  { %v1260_v36 = vadd.f32 %v1259_v32, %v1258_v28  ;;  %v1252_v37 = vrot.slane %v1251_v3, 4  ;;  %v1202_v38 = vadd.f32 %v1874_v35, %v2331_v59  ;;  %v1229_v50 = vmax.f32 %v1191_v39, 0.0 }
 0x370   :  { %v1193_v40 = vpop.f32.mrf.mxu0  ;;  %v1302_v32 = vpack.c.bf16 %v1294_v21, %v1294_v21  ;;  %v1303_v35 = vpack.c.bf16 %v1295_v26, %v1295_v26 }
 0x371   :  { %v1253_v42 = vadd.f32 %v1252_v37, %v1251_v3  ;;  %v1232_v44 = vmax.f32 %v1202_v38, 0.0  ;;  %v1194_v4 = vadd.f32 %v2331_v59, %v1193_v40  ;;  %v1261_v47 = vrot.slane %v1260_v36, 2 }
 0x372   :  { %v1877_v46 = vpop.f32.mrf.mxu0  ;;  %v1341_v41 = vunpack.c.l.b16 %v1302_v32 }
 0x373   :  { %v1254_v48 = vrot.slane %v1253_v42, 2  ;;  %v1272_v49 = vadd.f32 %v1232_v44, %v1231_v43  ;;  %v1230_v51 = vmax.f32 %v1194_v4, 0.0  ;;  %v1215_v11 = vadd.f32 %v1877_v46, %v2331_v59 }
 0x374   :  { %v1206_v52 = vpop.f32.mrf.mxu0  ;;  %v1262_v58 = vadd.f32 %v1261_v47, %v1260_v36  ;;  %v1342_v4 = vunpack.c.l.b16 %v1303_v35 }
 0x375   :  { %v1255_v7 = vadd.f32 %v1254_v48, %v1253_v42  ;;  %v1273_v54 = vrot.slane %v1272_v49, 4  ;;  %v1265_v56 = vadd.f32 %v1230_v51, %v1229_v50  ;;  %v1207_v61 = vadd.f32 %v2331_v59, %v1206_v52 }
 0x376   :  { %v1878_v57 = vpop.f32.mrf.mxu0  ;;  %v1235_v2 = vmax.f32 %v1215_v11, 0.0  ;;  %v1263_v13 = vrot.slane %v1262_v58, 1  ;;  %v1350_v50 = vsel %vm1349_vm4, %v1342_v4, %v1341_v41 }
 0x377   :  { %v1256_v60 = vrot.slane %v1255_v7, 1  ;;  %v1274_v8 = vadd.f32 %v1273_v54, %v1272_v49  ;;  %v1218_v15 = vadd.f32 %v1878_v57, %v2331_v59  ;;  %v1266_v12 = vrot.slane %v1265_v56, 4 }
 0x378   :  { %v1209_v62 = vpop.f32.mrf.mxu0  ;;  %v1233_v19 = vmax.f32 %v1207_v61, 0.0  ;;  %v1264_v27 = vadd.f32 %v1263_v13, %v1262_v58 }
 0x379   :  { %v1275_v1 = vrot.slane %v1274_v8, 2  ;;  %v1236_v16 = vmax.f32 %v1218_v15, 0.0  ;;  %v1257_v5 = vadd.f32 %v1256_v60, %v1255_v7  ;;  %v1267_v6 = vadd.f32 %v1266_v12, %v1265_v56 }
 0x37a   :  { %v1210_v9 = vadd.f32 %v2331_v59, %v1209_v62  ;;  %v1297_v36 = vmul.f32 0.0625, %v1264_v27 }
 0x37b   :  { %v1276_v14 = vadd.f32 %v1275_v1, %v1274_v8  ;;  %v1286_v17 = vadd.f32 %v1236_v16, %v1235_v2  ;;  %v1268_v18 = vrot.slane %v1267_v6, 2  ;;  %v1296_v23 = vmul.f32 0.0625, %v1257_v5  ;;  %v1969_v2 = vld [vmem:[#allocation7 + $0x8] sm:$0xff]   ;;  %v1970_v16 = vld [vmem:[#allocation7] sm:$0xff]  }
 0x37c   :  { %v1234_v20 = vmax.f32 %v1210_v9, 0.0  ;;  %v1305_v46 = vpack.c.bf16 %v1297_v36, %v1297_v36  ;;  %1912 = vmatpush3.bf16.msra.mxu0 %v1969_v2  ;;  %v1639_v5 = vld [vmem:[%s2366_s7] ss:$0 sm:$0xff]  ;;  %s2068_s7 = smov [#allocation8]  }
 0x37d   :  { %v1287_v22 = vrot.slane %v1286_v17, 4  ;;  %v1269_v24 = vadd.f32 %v1268_v18, %v1267_v6  ;;  %v1277_v28 = vrot.slane %v1276_v14, 1  ;;  %v1304_v3 = vpack.c.bf16 %v1296_v23, %v1296_v23  ;;  %1913 = vmatprep.subr.bf16.mxu0 %v2066_v0  ;;  %s1579_s21 = sshll.u32 %s2068_s7, 4  ;;  %s1580_s21 = int_to_ptr.vmem [resolvable:$true] %s1579_s21 }
 0x37e   :  { %v1279_v25 = vadd.f32 %v1234_v20, %v1233_v19  ;;  %v1344_v54 = vunpack.c.l.b16 %v1305_v46  ;;  %v1648_v19 = vld [vmem:[%s2368_s9] ss:$0 sm:$0xff]  ;;  %s2035_s22 = scalar_lea.vmem %s1580_s21, 128  ;;  %p2040_p2 = scmp.lt.s32.totalorder %s1580_s21, %s1580_s21 }
 0x37f   :  { %v1288_v29 = vadd.f32 %v1287_v22, %v1286_v17  ;;  %v1270_v30 = vrot.slane %v1269_v24, 1  ;;  %v1278_v37 = vadd.f32 %v1277_v28, %v1276_v14  ;;  %v1343_v43 = vunpack.c.l.b16 %v1304_v3  ;;  %p2036_p1 = scmp.ne.s32.totalorder %s1580_s21, %s2035_s22  ;;  %p2041_p3 = scmp.lt.s32.totalorder %s2035_s22, %s2035_s22 }
 0x380   :  { %v1280_v31 = vrot.slane %v1279_v25, 4  ;;  %1914 = vmatpush3.bf16.msra.mxu0 %v1970_v16 }
 0x381   :  { %v1289_v59 = vrot.slane %v1288_v29, 2  ;;  %v1271_v33 = vadd.f32 %v1270_v30, %v1269_v24  ;;  %v1299_v47 = vmul.f32 0.0625, %v1278_v37  ;;  %v1352_v52 = vsel %vm1351_vm5, %v1343_v43, %v1350_v50  ;;  %p2042_p4 = por %p2041_p3, %p2040_p2 }
 0x382   :  { %v1281_v34 = vadd.f32 %v1280_v31, %v1279_v25  ;;  %v1354_v57 = vsel %vm1353_vm6, %v1344_v54, %v1352_v52 }
 0x383   :  { %v1290_v38 = vadd.f32 %v1289_v59, %v1288_v29  ;;  %v1298_v39 = vmul.f32 0.0625, %v1271_v33  ;;  %v1307_v11 = vpack.c.bf16 %v1299_v47, %v1299_v47  ;;  %p2043_p5 = pnand %p2042_p4, %p2036_p1 }
 0x384   :  { %v1282_v40 = vrot.slane %v1281_v34, 2 }
 0x385   :  { %v1291_v42 = vrot.slane %v1290_v38, 1  ;;  %v1306_v44 = vpack.c.bf16 %v1298_v39, %v1298_v39  ;;  %v1346_v8 = vunpack.c.l.b16 %v1307_v11 }
 0x386   :  { %v1283_v45 = vadd.f32 %v1282_v40, %v1281_v34 }
 0x387   :  { %v1292_v48 = vadd.f32 %v1291_v42, %v1290_v38  ;;  %v1345_v53 = vunpack.c.l.b16 %v1306_v44 }
 0x388   :  { %v1284_v49 = vrot.slane %v1283_v45, 1 }
 0x389   :  { %v1301_v51 = vmul.f32 0.0625, %v1292_v48  ;;  %v1356_v60 = vsel %vm1355_vm7, %v1345_v53, %v1354_v57 }
 0x38a   :  { %v1285_v7 = vadd.f32 %v1284_v49, %v1283_v45  ;;  %v1358_v61 = vsel %vm1357_vm8, %v1346_v8, %v1356_v60 }
 0x38b   :  { %v1309_v56 = vpack.c.bf16 %v1301_v51, %v1301_v51 }
 0x38c   :  { %v1300_v55 = vmul.f32 0.0625, %v1285_v7 }
 0x38d   :  { %v1348_v12 = vunpack.c.l.b16 %v1309_v56 }
 0x38e   :  { %v1308_v58 = vpack.c.bf16 %v1300_v55, %v1300_v55 }
 0x390   :  { %v1347_v15 = vunpack.c.l.b16 %v1308_v58 }
 0x392   :  { %v1360_v62 = vsel %vm1359_vm9, %v1347_v15, %v1358_v61 }
 0x393   :  { %v1362_v63 = vsel %vm1361_vm10, %v1348_v12, %v1360_v62 }
 0x394   :  { %v1363_v1 = vpack.c.b16 %v1362_v63, %v1362_v63 }
 0x396   :  { %1896 = vmatmul.mubr.bf16.vlgmr.msra.gmra.mxu1 %v1363_v1 }
 0x456   :  { %v1447_v6 = vpop.f32.mrf.mxu1 }
 0x457   :  { %v1448_v9 = vadd.f32 %v1639_v5, %v1447_v6 }
 0x458   :  { %v1897_v10 = vpop.f32.mrf.mxu1 }
 0x459   :  { %v1453_v13 = vmax.f32 %v1448_v9, 0.0 }
 0x45a   :  { %v1450_v14 = vpop.f32.mrf.mxu1 }
 0x45b   :  { %v1454_v17 = vpack.c.bf16 %v1453_v13, %v1453_v13 }
 0x45c   :  { %v1898_v18 = vpop.f32.mrf.mxu1 }
 0x45d   :  { %1916 = vmatmul.mubr.bf16.vlgmr.msra.gmra.mxu0 %v1454_v17 }
 0x51d   :  { %v1560_v20 = vpop.f32.mrf.mxu0 }
 0x51e   :  { %v1561_v0 = vadd.f32 %v1648_v19, %v1560_v20 }
 0x51f   :  { %v1917_v21 = vpop.f32.mrf.mxu0 }
 0x520   :  { %v1657_v22 = vmul.f32 -1.442695, %v1561_v0 }
 0x521   :  { %v1563_v23 = vpop.f32.mrf.mxu0 }
 0x522   :  { %1971 = vpow2.f32 %v1657_v22 }
 0x523   :  { %v1918_v24 = vpop.f32.mrf.mxu0 }
 0x52f   :  { %v1972_v25 = vpop.eup %1971 }
 0x530   :  { %v1569_v26 = vadd.f32 1.0, %v1972_v25 }
 0x532   :  { %1973 = vrcp.f32 %v1569_v26 }
 0x53f   :  { %v1974_v27 = vpop.eup %1973 }
 0x540   :  { %1572 = vst [vmem:[#allocation8] sm:$0xff] %v1974_v27 }
 0x541   :  { %2046 = shalt.err (!%p2043_p5)
}
 0x542   :  { %1582 = dma.vmem_to_hbm [thread:$0]  %s1580_s21, 128, %s2369_s10, [#allocation4]  }
 0x543   :  { %2059 = dma.done.wait [#allocation4], 128  }
 0x544   :  { %2060 = vsyncadd [#allocation4], 4294967168 }
 0x545   :  { %1586 = vsyncpa [#allocation3], 1 }
 0x546   :  { %1587 = vsyncpa [#allocation6], 1 }
 0x547   :  { %1588 = vsyncpa [#allocation4], 1 }

</bundles_post_ra>
